<compile_context>
chip_gen: v5e
topology: v5e:2x2
jax: 0.10.0
libtpu: 0.0.40
codegen_flags: <defaults>
</compile_context>

<pallas_src>
import functools

import jax
import jax.numpy as jnp
from jax.experimental import pallas as pl
from jax.experimental.pallas import tpu as pltpu

IN_F = 512
HID1 = 512
HID2 = 256
OUT_F = 2
OUT_PAD = 128            # lane-dense padded output width
DEFAULT_TILE_B = 2048    # batch rows per grid step (upper bound)


def _cdiv(a, b):
    return -(-a // b)


def _round_up(x, m):
    return ((x + m - 1) // m) * m


def _discriminator_kernel(x_ref, w1_ref, b1_ref, w2_ref, b2_ref, w3_ref, b3_ref,
                          o_ref):
    # x tile: (TILE_B, 512) f32 -> cast to bf16 in-kernel (MXU operand).
    x = x_ref[...].astype(jnp.bfloat16)

    # --- Linear(512, 512) + LeakyReLU(0.2) ---
    h1 = jnp.dot(x, w1_ref[...], preferred_element_type=jnp.float32)
    h1 = h1 + b1_ref[...]
    h1 = jnp.maximum(h1, 0.2 * h1)
    # Dropout(0.3) -> identity in eval mode.

    # --- Linear(512, 256) + LeakyReLU(0.2) ---
    h2 = jnp.dot(h1.astype(jnp.bfloat16), w2_ref[...],
                 preferred_element_type=jnp.float32)
    h2 = h2 + b2_ref[...]
    h2 = jnp.maximum(h2, 0.2 * h2)
    # Dropout(0.3) -> identity in eval mode.

    # --- Linear(256, 2 -> padded 128) + Sigmoid ---
    h3 = jnp.dot(h2.astype(jnp.bfloat16), w3_ref[...],
                 preferred_element_type=jnp.float32)
    h3 = h3 + b3_ref[...]
    # bf16 lane-dense (128-wide) unmasked store; wrapper slices [:, :2].
    o_ref[...] = jax.nn.sigmoid(h3).astype(jnp.bfloat16)


def prepare_params(params):
    """One-time conversion of PyTorch-layout params ((out,in) W, (out,) b) into
    the kernel layout: bf16 (in,out) weights, f32 (1,out) biases, last layer
    zero-padded to OUT_PAD columns."""
    w1, b1, w2, b2, w3, b3 = params
    w1t = jnp.asarray(w1.T, jnp.bfloat16)                      # (512, 512)
    w2t = jnp.asarray(w2.T, jnp.bfloat16)                      # (512, 256)
    w3t = jnp.zeros((HID2, OUT_PAD), jnp.bfloat16).at[:, :OUT_F].set(
        jnp.asarray(w3.T, jnp.bfloat16))                       # (256, 128)
    b1r = jnp.asarray(b1, jnp.float32).reshape(1, HID1)
    b2r = jnp.asarray(b2, jnp.float32).reshape(1, HID2)
    b3r = jnp.zeros((1, OUT_PAD), jnp.float32).at[:, :OUT_F].set(
        jnp.asarray(b3, jnp.float32))
    return (w1t, b1r, w2t, b2r, w3t, b3r)


def _choose_tile(B, tile_b):
    """Pick a batch tile (multiple of 16) so that
       * padding never exceeds one tile's rounding slack (< tb rows, tb ~ B/n),
       * there are >= 2 grid steps when B >= 32 (v7x megacore sharding)."""
    n_steps = _cdiv(B, tile_b)
    if B >= 32:
        n_steps = max(n_steps, 2)
    tb = _round_up(_cdiv(B, n_steps), 16)
    Bp = _round_up(B, tb)
    return tb, Bp


@functools.partial(jax.jit, static_argnames=("tile_b",))
def discriminator_forward(x, kernel_params, *, tile_b=DEFAULT_TILE_B):
    """x: any shape with leading batch dim and 512 trailing elements.
    kernel_params: output of prepare_params(). Returns (B, 2) float32."""
    B = x.shape[0]
    xf = x.reshape(B, IN_F).astype(jnp.float32)   # no-op cast for f32 inputs

    tb, Bp = _choose_tile(B, tile_b)
    if Bp != B:
        xf = jnp.pad(xf, ((0, Bp - B), (0, 0)))

    w1t, b1r, w2t, b2r, w3t, b3r = kernel_params

    grid = (Bp // tb,)
    const = lambda i: (0, 0)

    weight_bytes = (IN_F * HID1 + HID1 * HID2 + HID2 * OUT_PAD) * 2 \
        + (HID1 + HID2 + OUT_PAD) * 4
    cost = pl.CostEstimate(
        flops=2 * Bp * (IN_F * HID1 + HID1 * HID2 + HID2 * OUT_PAD),
        transcendentals=Bp * OUT_PAD,
        bytes_accessed=Bp * IN_F * 4 + Bp * OUT_PAD * 2 + weight_bytes,
    )

    out = pl.pallas_call(
        _discriminator_kernel,
        out_shape=jax.ShapeDtypeStruct((Bp, OUT_PAD), jnp.bfloat16),
        grid=grid,
        in_specs=[
            pl.BlockSpec((tb, IN_F), lambda i: (i, 0)),        # x tile (streamed, f32)
            pl.BlockSpec((IN_F, HID1), const),                 # w1 (resident)
            pl.BlockSpec((1, HID1), const),                    # b1
            pl.BlockSpec((HID1, HID2), const),                 # w2
            pl.BlockSpec((1, HID2), const),                    # b2
            pl.BlockSpec((HID2, OUT_PAD), const),              # w3 (padded)
            pl.BlockSpec((1, OUT_PAD), const),                 # b3 (padded)
        ],
        out_specs=pl.BlockSpec((tb, OUT_PAD), lambda i: (i, 0)),
        compiler_params=pltpu.CompilerParams(
            dimension_semantics=("parallel",),
            vmem_limit_bytes=48 * 1024 * 1024,
        ),
        cost_estimate=cost,
    )(xf, w1t, b1r, w2t, b2r, w3t, b3r)

    return out[:B, :OUT_F].astype(jnp.float32)


def init_params(key):
    """Deterministic parameter init (PyTorch Linear shapes: W is (out, in))."""
    ks = jax.random.split(key, 6)

    def linear(kw, kb, out_f, in_f):
        bound = 1.0 / jnp.sqrt(in_f)
        w = jax.random.uniform(kw, (out_f, in_f), jnp.float32, -bound, bound)
        b = jax.random.uniform(kb, (out_f,), jnp.float32, -bound, bound)
        return w, b

    w1, b1 = linear(ks[0], ks[1], HID1, IN_F)
    w2, b2 = linear(ks[2], ks[3], HID2, HID1)
    w3, b3 = linear(ks[4], ks[5], OUT_F, HID2)
    return (w1, b1, w2, b2, w3, b3)


def _reference_forward(x, params):
    """Pure-JAX f32 reference (eval-mode dropout) for a sanity check."""
    B = x.shape[0]
    h = x.reshape(B, IN_F).astype(jnp.float32)
    w1, b1, w2, b2, w3, b3 = params
    h = h @ w1.T + b1
    h = jnp.where(h >= 0.0, h, 0.2 * h)
    h = h @ w2.T + b2
    h = jnp.where(h >= 0.0, h, 0.2 * h)
    h = h @ w3.T + b3
    return jax.nn.sigmoid(h)


if __name__ == "__main__":
    key = jax.random.PRNGKey(0)
    k_x, k_p = jax.random.split(key)

    # Input mimics something flattened by x.view(B, 512): (B, C, H, W) with
    # C*H*W == 512.
    B = 8
    x = jax.random.normal(k_x, (B, 2, 16, 16), dtype=jnp.float32)

    params = init_params(k_p)
    kernel_params = prepare_params(params)   # one-time layout conversion

    out = discriminator_forward(x, kernel_params)
    out = jax.block_until_ready(out)

    ref = _reference_forward(x, params)
    assert out.shape == (B, OUT_F)
    # bf16 MXU operands / bf16 output store vs f32 reference -> loosened tol.
    assert jnp.allclose(out, ref, atol=2e-2, rtol=2e-2), (
        float(jnp.max(jnp.abs(out - ref))))

    print("KERNEL_OK")
</pallas_src>

<mosaic_0001>
module attributes {stable_mosaic.version = 11 : i64} {
  func.func @_discriminator_kernel(%arg0: i32, %arg1: memref<16x512xf32, #tpu.memory_space<vmem>>, %arg2: memref<512x512xbf16, #tpu.memory_space<vmem>>, %arg3: memref<1x512xf32, #tpu.memory_space<vmem>>, %arg4: memref<512x256xbf16, #tpu.memory_space<vmem>>, %arg5: memref<1x256xf32, #tpu.memory_space<vmem>>, %arg6: memref<256x128xbf16, #tpu.memory_space<vmem>>, %arg7: memref<1x128xf32, #tpu.memory_space<vmem>>, %arg8: memref<16x128xbf16, #tpu.memory_space<vmem>>) attributes {dimension_semantics = [#tpu.dimension_semantics<parallel>], iteration_bounds = array<i64: 1>, scalar_prefetch = 0 : i64, scratch_operands = 0 : i64, tpu.core_type = #tpu.core_type<tc>, window_params = [{transform_indices = @transform_0, window_bounds = array<i64: 16, 512>}, {pipeline_mode = #tpu.pipeline_mode<synchronous>, transform_indices = @transform_1, window_bounds = array<i64: 512, 512>}, {pipeline_mode = #tpu.pipeline_mode<synchronous>, transform_indices = @transform_2, window_bounds = array<i64: 1, 512>}, {pipeline_mode = #tpu.pipeline_mode<synchronous>, transform_indices = @transform_3, window_bounds = array<i64: 512, 256>}, {pipeline_mode = #tpu.pipeline_mode<synchronous>, transform_indices = @transform_4, window_bounds = array<i64: 1, 256>}, {pipeline_mode = #tpu.pipeline_mode<synchronous>, transform_indices = @transform_5, window_bounds = array<i64: 256, 128>}, {pipeline_mode = #tpu.pipeline_mode<synchronous>, transform_indices = @transform_6, window_bounds = array<i64: 1, 128>}, {transform_indices = @transform_7, window_bounds = array<i64: 16, 128>}]} {
    %c0 = arith.constant 0 : index
    %c0_0 = arith.constant 0 : index
    %0 = vector.load %arg1[%c0, %c0_0] : memref<16x512xf32, #tpu.memory_space<vmem>>, vector<16x512xf32>
    %1 = arith.truncf %0 : vector<16x512xf32> to vector<16x512xbf16>
    %c0_1 = arith.constant 0 : index
    %c0_2 = arith.constant 0 : index
    %2 = vector.load %arg2[%c0_1, %c0_2] : memref<512x512xbf16, #tpu.memory_space<vmem>>, vector<512x512xbf16>
    %cst = arith.constant dense<0.000000e+00> : vector<16x512xf32>
    %3 = tpu.matmul %1, %2, %cst {dimension_numbers = #tpu.dot_dimension_numbers<[1], [0], [0], [1], [0, 0, 1, 1], [], []>} : vector<16x512xbf16>, vector<512x512xbf16>, vector<16x512xf32> -> vector<16x512xf32>
    %c0_3 = arith.constant 0 : index
    %c0_4 = arith.constant 0 : index
    %4 = vector.load %arg3[%c0_3, %c0_4] : memref<1x512xf32, #tpu.memory_space<vmem>>, vector<1x512xf32>
    %5 = vector.broadcast %4 : vector<1x512xf32> to vector<16x512xf32>
    %6 = arith.addf %3, %5 : vector<16x512xf32>
    %cst_5 = arith.constant 2.000000e-01 : f32
    %7 = vector.broadcast %cst_5 : f32 to vector<16x512xf32>
    %8 = arith.mulf %7, %6 : vector<16x512xf32>
    %9 = arith.maximumf %6, %8 : vector<16x512xf32>
    %10 = arith.truncf %9 : vector<16x512xf32> to vector<16x512xbf16>
    %c0_6 = arith.constant 0 : index
    %c0_7 = arith.constant 0 : index
    %11 = vector.load %arg4[%c0_6, %c0_7] : memref<512x256xbf16, #tpu.memory_space<vmem>>, vector<512x256xbf16>
    %cst_8 = arith.constant dense<0.000000e+00> : vector<16x256xf32>
    %12 = tpu.matmul %10, %11, %cst_8 {dimension_numbers = #tpu.dot_dimension_numbers<[1], [0], [0], [1], [0, 0, 1, 1], [], []>} : vector<16x512xbf16>, vector<512x256xbf16>, vector<16x256xf32> -> vector<16x256xf32>
    %c0_9 = arith.constant 0 : index
    %c0_10 = arith.constant 0 : index
    %13 = vector.load %arg5[%c0_9, %c0_10] : memref<1x256xf32, #tpu.memory_space<vmem>>, vector<1x256xf32>
    %14 = vector.broadcast %13 : vector<1x256xf32> to vector<16x256xf32>
    %15 = arith.addf %12, %14 : vector<16x256xf32>
    %cst_11 = arith.constant 2.000000e-01 : f32
    %16 = vector.broadcast %cst_11 : f32 to vector<16x256xf32>
    %17 = arith.mulf %16, %15 : vector<16x256xf32>
    %18 = arith.maximumf %15, %17 : vector<16x256xf32>
    %19 = arith.truncf %18 : vector<16x256xf32> to vector<16x256xbf16>
    %c0_12 = arith.constant 0 : index
    %c0_13 = arith.constant 0 : index
    %20 = vector.load %arg6[%c0_12, %c0_13] : memref<256x128xbf16, #tpu.memory_space<vmem>>, vector<256x128xbf16>
    %cst_14 = arith.constant dense<0.000000e+00> : vector<16x128xf32>
    %21 = tpu.matmul %19, %20, %cst_14 {dimension_numbers = #tpu.dot_dimension_numbers<[1], [0], [0], [1], [0, 0, 1, 1], [], []>} : vector<16x256xbf16>, vector<256x128xbf16>, vector<16x128xf32> -> vector<16x128xf32>
    %c0_15 = arith.constant 0 : index
    %c0_16 = arith.constant 0 : index
    %22 = vector.load %arg7[%c0_15, %c0_16] : memref<1x128xf32, #tpu.memory_space<vmem>>, vector<1x128xf32>
    %23 = vector.broadcast %22 : vector<1x128xf32> to vector<16x128xf32>
    %24 = arith.addf %21, %23 : vector<16x128xf32>
    %25 = arith.negf %24 : vector<16x128xf32>
    %26 = math.exp %25 : vector<16x128xf32>
    %cst_17 = arith.constant 1.000000e+00 : f32
    %27 = vector.broadcast %cst_17 : f32 to vector<16x128xf32>
    %28 = arith.addf %27, %26 : vector<16x128xf32>
    %29 = arith.divf %27, %28 : vector<16x128xf32>
    %30 = arith.truncf %29 : vector<16x128xf32> to vector<16x128xbf16>
    %c0_18 = arith.constant 0 : index
    %c0_19 = arith.constant 0 : index
    %31 = vector.load %arg8[%c0_18, %c0_19] : memref<16x128xbf16, #tpu.memory_space<vmem>>, vector<16x128xbf16>
    tpu.vector_store %arg8[%c0_18, %c0_19], %30 {strides = array<i32>} : memref<16x128xbf16, #tpu.memory_space<vmem>>, vector<16x128xbf16>,
    return
  }
  func.func @transform_0(%arg0: i32) -> (i32, i32) {
    %c0_i32 = arith.constant 0 : i32
    %c0_i32_0 = arith.constant 0 : i32
    return %arg0, %c0_i32 : i32, i32
  }
  func.func @transform_1(%arg0: i32) -> (i32, i32) {
    %c0_i32 = arith.constant 0 : i32
    %c0_i32_0 = arith.constant 0 : i32
    %c0_i32_1 = arith.constant 0 : i32
    return %c0_i32, %c0_i32_0 : i32, i32
  }
  func.func @transform_2(%arg0: i32) -> (i32, i32) {
    %c0_i32 = arith.constant 0 : i32
    %c0_i32_0 = arith.constant 0 : i32
    %c0_i32_1 = arith.constant 0 : i32
    return %c0_i32, %c0_i32_0 : i32, i32
  }
  func.func @transform_3(%arg0: i32) -> (i32, i32) {
    %c0_i32 = arith.constant 0 : i32
    %c0_i32_0 = arith.constant 0 : i32
    %c0_i32_1 = arith.constant 0 : i32
    return %c0_i32, %c0_i32_0 : i32, i32
  }
  func.func @transform_4(%arg0: i32) -> (i32, i32) {
    %c0_i32 = arith.constant 0 : i32
    %c0_i32_0 = arith.constant 0 : i32
    %c0_i32_1 = arith.constant 0 : i32
    return %c0_i32, %c0_i32_0 : i32, i32
  }
  func.func @transform_5(%arg0: i32) -> (i32, i32) {
    %c0_i32 = arith.constant 0 : i32
    %c0_i32_0 = arith.constant 0 : i32
    %c0_i32_1 = arith.constant 0 : i32
    return %c0_i32, %c0_i32_0 : i32, i32
  }
  func.func @transform_6(%arg0: i32) -> (i32, i32) {
    %c0_i32 = arith.constant 0 : i32
    %c0_i32_0 = arith.constant 0 : i32
    %c0_i32_1 = arith.constant 0 : i32
    return %c0_i32, %c0_i32_0 : i32, i32
  }
  func.func @transform_7(%arg0: i32) -> (i32, i32) {
    %c0_i32 = arith.constant 0 : i32
    %c0_i32_0 = arith.constant 0 : i32
    return %arg0, %c0_i32 : i32, i32
  }
}

</mosaic_0001>

<bundles_post_ra>
// kernel: discriminator_forward.1
= control target key start
LH: loop header
LB: loop body
LE: loop exit
PB: predicated region body
PF: predicated region fallthrough
CT: control target
= control target key end

     0   :  { %12 = vsyncpa [#allocation3], 0  ;;  %s3092_s0 = inlined_call_operand.vmem [shape: f32[16,512], index: 0, kind: input, shape index: {}]   ;;  %s3093_s1 = inlined_call_operand.hbm [shape: bf16[512,512], index: 1, kind: input, shape index: {}]   ;;  %s3094_s2 = inlined_call_operand.vmem [shape: f32[1,512], index: 2, kind: input, shape index: {}]   ;;  %s3095_s3 = inlined_call_operand.hbm [shape: bf16[512,256], index: 3, kind: input, shape index: {}]   ;;  %s3096_s4 = inlined_call_operand.vmem [shape: f32[1,256], index: 4, kind: input, shape index: {}]   ;;  %s3097_s5 = inlined_call_operand.vmem [shape: bf16[256,128], index: 5, kind: input, shape index: {}]   ;;  %s3098_s6 = inlined_call_operand.vmem [shape: f32[1,128], index: 6, kind: input, shape index: {}]   ;;  %s3099_s7 = inlined_call_operand.vmem [shape: bf16[16,128], index: 7, kind: output, shape index: {}]  }
   0x1   :  { %s20_s26 = sshll.u32 %s3093_s1, 4  ;;  %s21_s26 = int_to_ptr.hbm [resolvable:$true] %s20_s26 }
   0x2   :  { %13 = vsyncpa [#allocation5], 0  ;;  %s2926_s27 = smov [#allocation2]   ;;  %s35_s8 = sshll.u32 %s3095_s3, 4  ;;  %s36_s8 = int_to_ptr.hbm [resolvable:$true] %s35_s8 }
   0x3   :  { %s22_s28 = sshll.u32 %s2926_s27, 4  ;;  %s2927_s9 = smov 256   ;;  %s23_s28 = int_to_ptr.vmem [resolvable:$true] %s22_s28 }
   0x4   :  { %s2928_s10 = smov 16   ;;  %s2929_s11 = smov [#allocation4]  }
   0x5   :  { %28 = dma.hbm_to_vmem [thread:$0]  %s21_s26, 16384, %s23_s28, [#allocation3], %s2927_s9, %s2927_s9, %s2928_s10  }
   0x6   :  { %s37_s12 = sshll.u32 %s2929_s11, 4  ;;  %s2930_s13 = smov 128   ;;  %s38_s12 = int_to_ptr.vmem [resolvable:$true] %s37_s12 }
   0x7   :  { %s2931_s14 = smov 8  }
   0x8   :  { %43 = dma.hbm_to_vmem [thread:$0]  %s36_s8, 8192, %s38_s12, [#allocation5], %s2930_s13, %s2930_s13, %s2931_s14  }
   0x9   :  { %2922 = dma.done.wait [#allocation3], 16384  }
   0xa   :  { %2923 = vsyncadd [#allocation3], 4294950912 }
   0xb   :  { %2924 = dma.done.wait [#allocation5], 8192  }
   0xc   :  { %2925 = vsyncadd [#allocation5], 4294959104  ;;  %v1926_v0 = vld [vmem:[#allocation2 + $0xe0] sm:$0xf]  ;;  %v2676_v1 = vld [vmem:[#allocation2 + $0xec] sm:$0xf0] }
   0xd   :  { %v2054_v2 = vld [vmem:[#allocation2 + $0x1e0] sm:$0xf]  ;;  %v1927_v3 = vor.u32 %v2676_v1, %v1926_v0  ;;  %v2708_v4 = vld [vmem:[#allocation2 + $0x1ec] sm:$0xf0] }
   0xe   :  { %v2182_v5 = vld [vmem:[#allocation2 + $0x2e0] sm:$0xf]  ;;  %v2740_v6 = vld [vmem:[#allocation2 + $0x2ec] sm:$0xf0]  ;;  %v2055_v7 = vor.u32 %v2708_v4, %v2054_v2 }
   0xf   :  { %v2183_v8 = vor.u32 %v2740_v6, %v2182_v5  ;;  %v2310_v9 = vld [vmem:[#allocation2 + $0x3e0] sm:$0xf]  ;;  %v2772_v10 = vld [vmem:[#allocation2 + $0x3ec] sm:$0xf0]  ;;  %848 = vmatpush.bf16.msra.mxu0 %v1927_v3 }
  0x10   :  { %v1910_v11 = vld [vmem:[#allocation2 + $0xc0] sm:$0xf]  ;;  %v2311_v12 = vor.u32 %v2772_v10, %v2310_v9  ;;  %v2672_v13 = vld [vmem:[#allocation2 + $0xcc] sm:$0xf0]  ;;  %862 = vmatpush.bf16.msra.mxu1 %v2055_v7 }
  0x11   :  { %v2038_v14 = vld [vmem:[#allocation2 + $0x1c0] sm:$0xf]  ;;  %v2704_v15 = vld [vmem:[#allocation2 + $0x1cc] sm:$0xf0]  ;;  %876 = vmatpush.bf16.msra.mxu2 %v2183_v8  ;;  %v1911_v16 = vor.u32 %v2672_v13, %v1910_v11 }
  0x12   :  { %v2039_v17 = vor.u32 %v2704_v15, %v2038_v14  ;;  %v2166_v18 = vld [vmem:[#allocation2 + $0x2c0] sm:$0xf]  ;;  %v2736_v19 = vld [vmem:[#allocation2 + $0x2cc] sm:$0xf0]  ;;  %890 = vmatpush.bf16.msra.mxu3 %v2311_v12 }
  0x13   :  { %v2294_v20 = vld [vmem:[#allocation2 + $0x3c0] sm:$0xf]  ;;  %v2167_v21 = vor.u32 %v2736_v19, %v2166_v18  ;;  %v2768_v22 = vld [vmem:[#allocation2 + $0x3cc] sm:$0xf0]  ;;  %849 = vmatpush.bf16.msra.mxu0 %v1911_v16 }
  0x14   :  { %v1894_v23 = vld [vmem:[#allocation2 + $0xa0] sm:$0xf]  ;;  %v2668_v24 = vld [vmem:[#allocation2 + $0xac] sm:$0xf0]  ;;  %v2295_v25 = vor.u32 %v2768_v22, %v2294_v20  ;;  %863 = vmatpush.bf16.msra.mxu1 %v2039_v17 }
  0x15   :  { %v2022_v26 = vld [vmem:[#allocation2 + $0x1a0] sm:$0xf]  ;;  %v2700_v27 = vld [vmem:[#allocation2 + $0x1ac] sm:$0xf0]  ;;  %v1895_v29 = vor.u32 %v2668_v24, %v1894_v23  ;;  %877 = vmatpush.bf16.msra.mxu2 %v2167_v21 }
  0x16   :  { %v2150_v28 = vld [vmem:[#allocation2 + $0x2a0] sm:$0xf]  ;;  %v2732_v30 = vld [vmem:[#allocation2 + $0x2ac] sm:$0xf0]  ;;  %v2023_v33 = vor.u32 %v2700_v27, %v2022_v26  ;;  %891 = vmatpush.bf16.msra.mxu3 %v2295_v25  ;;  %v2674_v27 = vld [vmem:[#allocation2 + $0xe4] sm:$0xf] }
  0x17   :  { %v2278_v31 = vld [vmem:[#allocation2 + $0x3a0] sm:$0xf]  ;;  %v2764_v32 = vld [vmem:[#allocation2 + $0x3ac] sm:$0xf0]  ;;  %v2151_v34 = vor.u32 %v2732_v30, %v2150_v28  ;;  %850 = vmatpush.bf16.msra.mxu0 %v1895_v29  ;;  %v1928_v29 = vld [vmem:[#allocation2 + $0xf0] sm:$0xf0] }
  0x18   :  { %v1878_v35 = vld [vmem:[#allocation2 + $0x80] sm:$0xf]  ;;  %v2664_v36 = vld [vmem:[#allocation2 + $0x8c] sm:$0xf0]  ;;  %v2279_v38 = vor.u32 %v2764_v32, %v2278_v31  ;;  %864 = vmatpush.bf16.msra.mxu1 %v2023_v33  ;;  %v2706_v30 = vld [vmem:[#allocation2 + $0x1e4] sm:$0xf] }
  0x19   :  { %v2006_v37 = vld [vmem:[#allocation2 + $0x180] sm:$0xf]  ;;  %v2696_v39 = vld [vmem:[#allocation2 + $0x18c] sm:$0xf0]  ;;  %v1879_v44 = vor.u32 %v2664_v36, %v1878_v35  ;;  %878 = vmatpush.bf16.msra.mxu2 %v2151_v34  ;;  %v2056_v31 = vld [vmem:[#allocation2 + $0x1f0] sm:$0xf0] }
  0x1a   :  { %v2134_v40 = vld [vmem:[#allocation2 + $0x280] sm:$0xf]  ;;  %v2728_v41 = vld [vmem:[#allocation2 + $0x28c] sm:$0xf0]  ;;  %v2007_v45 = vor.u32 %v2696_v39, %v2006_v37  ;;  %892 = vmatpush.bf16.msra.mxu3 %v2279_v38  ;;  %v2738_v32 = vld [vmem:[#allocation2 + $0x2e4] sm:$0xf] }
  0x1b   :  { %v2262_v42 = vld [vmem:[#allocation2 + $0x380] sm:$0xf]  ;;  %v2760_v43 = vld [vmem:[#allocation2 + $0x38c] sm:$0xf0]  ;;  %v2135_v46 = vor.u32 %v2728_v41, %v2134_v40  ;;  %851 = vmatpush.bf16.msra.mxu0 %v1879_v44  ;;  %v2184_v33 = vld [vmem:[#allocation2 + $0x2f0] sm:$0xf0] }
  0x1c   :  { %v1862_v47 = vld [vmem:[#allocation2 + $0x60] sm:$0xf]  ;;  %v2660_v48 = vld [vmem:[#allocation2 + $0x6c] sm:$0xf0]  ;;  %v2263_v50 = vor.u32 %v2760_v43, %v2262_v42  ;;  %865 = vmatpush.bf16.msra.mxu1 %v2007_v45  ;;  %v2770_v34 = vld [vmem:[#allocation2 + $0x3e4] sm:$0xf]  ;;  %v1931_v45 = vor.u32 %v2674_v27, %v1928_v29 }
  0x1d   :  { %v1990_v49 = vld [vmem:[#allocation2 + $0x160] sm:$0xf]  ;;  %v2692_v51 = vld [vmem:[#allocation2 + $0x16c] sm:$0xf0]  ;;  %v1863_v56 = vor.u32 %v2660_v48, %v1862_v47  ;;  %879 = vmatpush.bf16.msra.mxu2 %v2135_v46  ;;  %v2312_v36 = vld [vmem:[#allocation2 + $0x3f0] sm:$0xf0] }
  0x1e   :  { %v2118_v52 = vld [vmem:[#allocation2 + $0x260] sm:$0xf]  ;;  %v2724_v53 = vld [vmem:[#allocation2 + $0x26c] sm:$0xf0]  ;;  %v1991_v57 = vor.u32 %v2692_v51, %v1990_v49  ;;  %893 = vmatpush.bf16.msra.mxu3 %v2263_v50  ;;  %v61_v43 = vld [vmem:[%s3092_s0 + $0x18] sm:$0xff]  ;;  %v2059_v49 = vor.u32 %v2706_v30, %v2056_v31  ;;  %v2187_v50 = vor.u32 %v2738_v32, %v2184_v33 }
  0x1f   :  { %v2246_v54 = vld [vmem:[#allocation2 + $0x360] sm:$0xf]  ;;  %v2756_v55 = vld [vmem:[#allocation2 + $0x36c] sm:$0xf0]  ;;  %v2119_v58 = vor.u32 %v2724_v53, %v2118_v52  ;;  %852 = vmatpush.bf16.msra.mxu0 %v1863_v56  ;;  %v65_v46 = vld [vmem:[%s3092_s0 + $0x38] sm:$0xff] }
  0x20   :  { %v1846_v59 = vld [vmem:[#allocation2 + $0x40] sm:$0xf]  ;;  %v2656_v60 = vld [vmem:[#allocation2 + $0x4c] sm:$0xf0]  ;;  %v2247_v62 = vor.u32 %v2756_v55, %v2246_v54  ;;  %866 = vmatpush.bf16.msra.mxu1 %v1991_v57  ;;  %v2670_v47 = vld [vmem:[#allocation2 + $0xc4] sm:$0xf]  ;;  %v2315_v54 = vor.u32 %v2770_v34, %v2312_v36 }
  0x21   :  { %v1974_v61 = vld [vmem:[#allocation2 + $0x140] sm:$0xf]  ;;  %v2688_v63 = vld [vmem:[#allocation2 + $0x14c] sm:$0xf0]  ;;  %v1847_v4 = vor.u32 %v2656_v60, %v1846_v59  ;;  %880 = vmatpush.bf16.msra.mxu2 %v2119_v58  ;;  %v1912_v48 = vld [vmem:[#allocation2 + $0xd0] sm:$0xf0]  ;;  %v3006_v60 = vpack.c.bf16 %v65_v46, %v61_v43 }
  0x22   :  { %v2102_v0 = vld [vmem:[#allocation2 + $0x240] sm:$0xf]  ;;  %v2720_v1 = vld [vmem:[#allocation2 + $0x24c] sm:$0xf0]  ;;  %v1975_v6 = vor.u32 %v2688_v63, %v1974_v61  ;;  %894 = vmatpush.bf16.msra.mxu3 %v2247_v62  ;;  %v2702_v51 = vld [vmem:[#allocation2 + $0x1c4] sm:$0xf]  ;;  %v1915_v63 = vor.u32 %v2670_v47, %v1912_v48 }
  0x23   :  { %v2230_v2 = vld [vmem:[#allocation2 + $0x340] sm:$0xf]  ;;  %v2752_v3 = vld [vmem:[#allocation2 + $0x34c] sm:$0xf0]  ;;  %v2103_v7 = vor.u32 %v2720_v1, %v2102_v0  ;;  %853 = vmatpush.bf16.msra.mxu0 %v1847_v4  ;;  %v59_v52 = vld [vmem:[%s3092_s0 + $0x8] sm:$0xff] }
  0x24   :  { %v1830_v5 = vld [vmem:[#allocation2 + $0x20] sm:$0xf]  ;;  %v2652_v8 = vld [vmem:[#allocation2 + $0x2c] sm:$0xf0]  ;;  %v2231_v11 = vor.u32 %v2752_v3, %v2230_v2  ;;  %867 = vmatpush.bf16.msra.mxu1 %v1975_v6  ;;  %v63_v53 = vld [vmem:[%s3092_s0 + $0x28] sm:$0xff] }
  0x25   :  { %v1958_v9 = vld [vmem:[#allocation2 + $0x120] sm:$0xf]  ;;  %v2684_v10 = vld [vmem:[#allocation2 + $0x12c] sm:$0xf0]  ;;  %v1831_v18 = vor.u32 %v2652_v8, %v1830_v5  ;;  %881 = vmatpush.bf16.msra.mxu2 %v2103_v7  ;;  %v2040_v56 = vld [vmem:[#allocation2 + $0x1d0] sm:$0xf0]  ;;  %v3008_v0 = vpack.c.bf16 %v63_v53, %v59_v52 }
  0x26   :  { %v2086_v12 = vld [vmem:[#allocation2 + $0x220] sm:$0xf]  ;;  %v2716_v13 = vld [vmem:[#allocation2 + $0x22c] sm:$0xf0]  ;;  %v1959_v23 = vor.u32 %v2684_v10, %v1958_v9  ;;  %895 = vmatpush.bf16.msra.mxu3 %v2231_v11  ;;  %v2734_v57 = vld [vmem:[#allocation2 + $0x2c4] sm:$0xf]  ;;  %v2043_v1 = vor.u32 %v2702_v51, %v2040_v56 }
  0x27   :  { %v2214_v14 = vld [vmem:[#allocation2 + $0x320] sm:$0xf]  ;;  %v2748_v15 = vld [vmem:[#allocation2 + $0x32c] sm:$0xf0]  ;;  %v2087_v24 = vor.u32 %v2716_v13, %v2086_v12  ;;  %854 = vmatpush.bf16.msra.mxu0 %v1831_v18  ;;  %v2168_v58 = vld [vmem:[#allocation2 + $0x2d0] sm:$0xf0] }
  0x28   :  { %v1814_v16 = vld [vmem:[#allocation2] sm:$0xf]  ;;  %v2648_v17 = vld [vmem:[#allocation2 + $0xc] sm:$0xf0]  ;;  %v2215_v28 = vor.u32 %v2748_v15, %v2214_v14  ;;  %868 = vmatpush.bf16.msra.mxu1 %v1959_v23  ;;  %v2766_v61 = vld [vmem:[#allocation2 + $0x3c4] sm:$0xf]  ;;  %v2171_v2 = vor.u32 %v2734_v57, %v2168_v58 }
  0x29   :  { %v1942_v19 = vld [vmem:[#allocation2 + $0x100] sm:$0xf]  ;;  %v2680_v20 = vld [vmem:[#allocation2 + $0x10c] sm:$0xf0]  ;;  %v1815_v35 = vor.u32 %v2648_v17, %v1814_v16  ;;  %882 = vmatpush.bf16.msra.mxu2 %v2087_v24  ;;  %v2296_v62 = vld [vmem:[#allocation2 + $0x3d0] sm:$0xf0] }
  0x2a   :  { %v2070_v21 = vld [vmem:[#allocation2 + $0x200] sm:$0xf]  ;;  %v2712_v22 = vld [vmem:[#allocation2 + $0x20c] sm:$0xf0]  ;;  %v1943_v39 = vor.u32 %v2680_v20, %v1942_v19  ;;  %896 = vmatpush.bf16.msra.mxu3 %v2215_v28  ;;  %v2666_v3 = vld [vmem:[#allocation2 + $0xa4] sm:$0xf]  ;;  %v2299_v6 = vor.u32 %v2766_v61, %v2296_v62 }
  0x2b   :  { %v2198_v25 = vld [vmem:[#allocation2 + $0x300] sm:$0xf]  ;;  %v2744_v26 = vld [vmem:[#allocation2 + $0x30c] sm:$0xf0]  ;;  %v2071_v40 = vor.u32 %v2712_v22, %v2070_v21  ;;  %855 = vmatpush.bf16.msra.mxu0 %v1815_v35  ;;  %v1896_v4 = vld [vmem:[#allocation2 + $0xb0] sm:$0xf0] }
  0x2c   :  { %v60_v37 = vld [vmem:[%s3092_s0 + $0x10] sm:$0xff]  ;;  %v58_v41 = vld [vmem:[%s3092_s0] sm:$0xff]  ;;  %v2199_v44 = vor.u32 %v2744_v26, %v2198_v25  ;;  %869 = vmatpush.bf16.msra.mxu1 %v1943_v39  ;;  %v1899_v12 = vor.u32 %v2666_v3, %v1896_v4 }
  0x2d   :  { %v64_v38 = vld [vmem:[%s3092_s0 + $0x30] sm:$0xff]  ;;  %v62_v42 = vld [vmem:[%s3092_s0 + $0x20] sm:$0xff]  ;;  %883 = vmatpush.bf16.msra.mxu2 %v2071_v40 }
  0x2e   :  { %v3002_v55 = vpack.c.bf16 %v64_v38, %v60_v37  ;;  %v3004_v59 = vpack.c.bf16 %v62_v42, %v58_v41  ;;  %897 = vmatpush.bf16.msra.mxu3 %v2199_v44  ;;  %v2698_v5 = vld [vmem:[#allocation2 + $0x1a4] sm:$0xf]  ;;  %v2024_v7 = vld [vmem:[#allocation2 + $0x1b0] sm:$0xf0] }
  0x2f   :  { %904 = vmatpush.bf16.msrb.mxu0 %v1931_v45  ;;  %v2730_v8 = vld [vmem:[#allocation2 + $0x2a4] sm:$0xf]  ;;  %v2152_v9 = vld [vmem:[#allocation2 + $0x2b0] sm:$0xf0]  ;;  %870 = vmatmul.bf16.vlgmr.msra.gmra.mxu1 %v3008_v0  ;;  %v2027_v13 = vor.u32 %v2698_v5, %v2024_v7 }
  0x30   :  { %918 = vmatpush.bf16.msrb.mxu1 %v2059_v49  ;;  %884 = vmatmul.bf16.vlgmr.msra.gmra.mxu2 %v3002_v55  ;;  %v2762_v10 = vld [vmem:[#allocation2 + $0x3a4] sm:$0xf]  ;;  %v2280_v11 = vld [vmem:[#allocation2 + $0x3b0] sm:$0xf0]  ;;  %v2155_v14 = vor.u32 %v2730_v8, %v2152_v9 }
  0x31   :  { %932 = vmatpush.bf16.msrb.mxu2 %v2187_v50  ;;  %856 = vmatmul.bf16.vlgmr.msra.gmra.mxu0 %v3004_v59  ;;  %v2662_v15 = vld [vmem:[#allocation2 + $0x84] sm:$0xf]  ;;  %v1880_v16 = vld [vmem:[#allocation2 + $0x90] sm:$0xf0]  ;;  %v2283_v18 = vor.u32 %v2762_v10, %v2280_v11 }
  0x32   :  { %946 = vmatpush.bf16.msrb.mxu3 %v2315_v54  ;;  %v2694_v17 = vld [vmem:[#allocation2 + $0x184] sm:$0xf]  ;;  %v2008_v19 = vld [vmem:[#allocation2 + $0x190] sm:$0xf0]  ;;  %v1883_v24 = vor.u32 %v2662_v15, %v1880_v16  ;;  %v2709_v16 = vld [vmem:[#allocation2 + $0x1f4] sm:$0xf0] }
  0x33   :  { %898 = vmatmul.bf16.vlgmr.msra.gmra.mxu3 %v3006_v60  ;;  %905 = vmatpush.bf16.msrb.mxu0 %v1915_v63  ;;  %v2726_v20 = vld [vmem:[#allocation2 + $0x284] sm:$0xf]  ;;  %v2136_v21 = vld [vmem:[#allocation2 + $0x290] sm:$0xf0]  ;;  %v2011_v25 = vor.u32 %v2694_v17, %v2008_v19  ;;  %v2190_v17 = vld [vmem:[#allocation2 + $0x2e8] sm:$0xf] }
  0x34   :  { %919 = vmatpush.bf16.msrb.mxu1 %v2043_v1  ;;  %v2758_v22 = vld [vmem:[#allocation2 + $0x384] sm:$0xf]  ;;  %v2264_v23 = vld [vmem:[#allocation2 + $0x390] sm:$0xf0]  ;;  %v2139_v26 = vor.u32 %v2726_v20, %v2136_v21  ;;  %v2318_v21 = vld [vmem:[#allocation2 + $0x3e8] sm:$0xf] }
  0x35   :  { %933 = vmatpush.bf16.msrb.mxu2 %v2171_v2  ;;  %v2658_v27 = vld [vmem:[#allocation2 + $0x64] sm:$0xf]  ;;  %v1864_v28 = vld [vmem:[#allocation2 + $0x70] sm:$0xf0]  ;;  %v2267_v30 = vor.u32 %v2758_v22, %v2264_v23  ;;  %v2773_v22 = vld [vmem:[#allocation2 + $0x3f4] sm:$0xf0] }
  0x36   :  { %947 = vmatpush.bf16.msrb.mxu3 %v2299_v6  ;;  %v2690_v29 = vld [vmem:[#allocation2 + $0x164] sm:$0xf]  ;;  %v1992_v31 = vld [vmem:[#allocation2 + $0x170] sm:$0xf0]  ;;  %v1867_v36 = vor.u32 %v2658_v27, %v1864_v28  ;;  %v1918_v27 = vld [vmem:[#allocation2 + $0xc8] sm:$0xf] }
  0x37   :  { %906 = vmatpush.bf16.msrb.mxu0 %v1899_v12  ;;  %v2722_v32 = vld [vmem:[#allocation2 + $0x264] sm:$0xf]  ;;  %v2120_v33 = vld [vmem:[#allocation2 + $0x270] sm:$0xf0]  ;;  %v1995_v37 = vor.u32 %v2690_v29, %v1992_v31  ;;  %v1934_v12 = vld [vmem:[#allocation2 + $0xe8] sm:$0xf] }
  0x38   :  { %920 = vmatpush.bf16.msrb.mxu1 %v2027_v13  ;;  %v2754_v34 = vld [vmem:[#allocation2 + $0x364] sm:$0xf]  ;;  %v2248_v35 = vld [vmem:[#allocation2 + $0x370] sm:$0xf0]  ;;  %v2123_v38 = vor.u32 %v2722_v32, %v2120_v33  ;;  %v2677_v13 = vld [vmem:[#allocation2 + $0xf4] sm:$0xf0] }
  0x39   :  { %934 = vmatpush.bf16.msrb.mxu2 %v2155_v14  ;;  %v2654_v39 = vld [vmem:[#allocation2 + $0x44] sm:$0xf]  ;;  %v1848_v40 = vld [vmem:[#allocation2 + $0x50] sm:$0xf0]  ;;  %v2251_v42 = vor.u32 %v2754_v34, %v2248_v35  ;;  %v2062_v14 = vld [vmem:[#allocation2 + $0x1e8] sm:$0xf] }
  0x3a   :  { %948 = vmatpush.bf16.msrb.mxu3 %v2283_v18  ;;  %v2686_v41 = vld [vmem:[#allocation2 + $0x144] sm:$0xf]  ;;  %v1976_v43 = vld [vmem:[#allocation2 + $0x150] sm:$0xf0]  ;;  %v1851_v48 = vor.u32 %v2654_v39, %v1848_v40  ;;  %v2741_v18 = vld [vmem:[#allocation2 + $0x2f4] sm:$0xf0] }
  0x3b   :  { %907 = vmatpush.bf16.msrb.mxu0 %v1883_v24  ;;  %v2718_v44 = vld [vmem:[#allocation2 + $0x244] sm:$0xf]  ;;  %v2104_v45 = vld [vmem:[#allocation2 + $0x250] sm:$0xf0]  ;;  %v1979_v49 = vor.u32 %v2686_v41, %v1976_v43  ;;  %v1935_v24 = vor.u32 %v2677_v13, %v1934_v12  ;;  %v2673_v28 = vld [vmem:[#allocation2 + $0xd4] sm:$0xf0] }
  0x3c   :  { %921 = vmatpush.bf16.msrb.mxu1 %v2011_v25  ;;  %v2750_v46 = vld [vmem:[#allocation2 + $0x344] sm:$0xf]  ;;  %v2232_v47 = vld [vmem:[#allocation2 + $0x350] sm:$0xf0]  ;;  %v2107_v50 = vor.u32 %v2718_v44, %v2104_v45  ;;  %v2063_v25 = vor.u32 %v2709_v16, %v2062_v14  ;;  %v2046_v29 = vld [vmem:[#allocation2 + $0x1c8] sm:$0xf] }
  0x3d   :  { %935 = vmatpush.bf16.msrb.mxu2 %v2139_v26  ;;  %v2650_v51 = vld [vmem:[#allocation2 + $0x24] sm:$0xf]  ;;  %v1832_v52 = vld [vmem:[#allocation2 + $0x30] sm:$0xf0]  ;;  %v2235_v54 = vor.u32 %v2750_v46, %v2232_v47  ;;  %v2191_v26 = vor.u32 %v2741_v18, %v2190_v17  ;;  %v2705_v31 = vld [vmem:[#allocation2 + $0x1d4] sm:$0xf0] }
  0x3e   :  { %949 = vmatpush.bf16.msrb.mxu3 %v2267_v30  ;;  %v2682_v53 = vld [vmem:[#allocation2 + $0x124] sm:$0xf]  ;;  %v1960_v56 = vld [vmem:[#allocation2 + $0x130] sm:$0xf0]  ;;  %v1835_v63 = vor.u32 %v2650_v51, %v1832_v52  ;;  %v2319_v30 = vor.u32 %v2773_v22, %v2318_v21  ;;  %v2174_v32 = vld [vmem:[#allocation2 + $0x2c8] sm:$0xf] }
  0x3f   :  { %908 = vmatpush.bf16.msrb.mxu0 %v1867_v36  ;;  %v2714_v57 = vld [vmem:[#allocation2 + $0x224] sm:$0xf]  ;;  %v2088_v58 = vld [vmem:[#allocation2 + $0x230] sm:$0xf0]  ;;  %v1963_v3 = vor.u32 %v2682_v53, %v1960_v56  ;;  %v2737_v33 = vld [vmem:[#allocation2 + $0x2d4] sm:$0xf0]  ;;  %v1919_v36 = vor.u32 %v2673_v28, %v1918_v27 }
  0x40   :  { %922 = vmatpush.bf16.msrb.mxu1 %v1995_v37  ;;  %v2746_v61 = vld [vmem:[#allocation2 + $0x324] sm:$0xf]  ;;  %v2216_v62 = vld [vmem:[#allocation2 + $0x330] sm:$0xf0]  ;;  %v2091_v4 = vor.u32 %v2714_v57, %v2088_v58  ;;  %v2302_v34 = vld [vmem:[#allocation2 + $0x3c8] sm:$0xf]  ;;  %v2047_v37 = vor.u32 %v2705_v31, %v2046_v29 }
  0x41   :  { %936 = vmatpush.bf16.msrb.mxu2 %v2123_v38  ;;  %v2646_v1 = vld [vmem:[#allocation2 + $0x4] sm:$0xf]  ;;  %v1816_v2 = vld [vmem:[#allocation2 + $0x10] sm:$0xf0]  ;;  %v2219_v8 = vor.u32 %v2746_v61, %v2216_v62  ;;  %v2769_v35 = vld [vmem:[#allocation2 + $0x3d4] sm:$0xf0]  ;;  %v2175_v38 = vor.u32 %v2737_v33, %v2174_v32 }
  0x42   :  { %950 = vmatpush.bf16.msrb.mxu3 %v2251_v42  ;;  %v2678_v5 = vld [vmem:[#allocation2 + $0x104] sm:$0xf]  ;;  %v1944_v6 = vld [vmem:[#allocation2 + $0x110] sm:$0xf0]  ;;  %v1819_v15 = vor.u32 %v2646_v1, %v1816_v2  ;;  %v1902_v39 = vld [vmem:[#allocation2 + $0xa8] sm:$0xf]  ;;  %v2303_v42 = vor.u32 %v2769_v35, %v2302_v34 }
  0x43   :  { %909 = vmatpush.bf16.msrb.mxu0 %v1851_v48  ;;  %v2710_v7 = vld [vmem:[#allocation2 + $0x204] sm:$0xf]  ;;  %v2072_v9 = vld [vmem:[#allocation2 + $0x210] sm:$0xf0]  ;;  %v1947_v19 = vor.u32 %v2678_v5, %v1944_v6  ;;  %v2669_v40 = vld [vmem:[#allocation2 + $0xb4] sm:$0xf0] }
  0x44   :  { %923 = vmatpush.bf16.msrb.mxu1 %v1979_v49  ;;  %v2742_v10 = vld [vmem:[#allocation2 + $0x304] sm:$0xf]  ;;  %v2200_v11 = vld [vmem:[#allocation2 + $0x310] sm:$0xf0]  ;;  %v2075_v20 = vor.u32 %v2710_v7, %v2072_v9  ;;  %v2030_v41 = vld [vmem:[#allocation2 + $0x1a8] sm:$0xf]  ;;  %v1903_v48 = vor.u32 %v2669_v40, %v1902_v39 }
  0x45   :  { %937 = vmatpush.bf16.msrb.mxu2 %v2107_v50  ;;  %v2203_v23 = vor.u32 %v2742_v10, %v2200_v11  ;;  %v2701_v43 = vld [vmem:[#allocation2 + $0x1b4] sm:$0xf0]  ;;  %v2158_v44 = vld [vmem:[#allocation2 + $0x2a8] sm:$0xf] }
  0x46   :  { %951 = vmatpush.bf16.msrb.mxu3 %v2235_v54  ;;  %v2733_v45 = vld [vmem:[#allocation2 + $0x2b4] sm:$0xf0]  ;;  %v2286_v46 = vld [vmem:[#allocation2 + $0x3a8] sm:$0xf]  ;;  %v2031_v49 = vor.u32 %v2701_v43, %v2030_v41 }
  0x47   :  { %910 = vmatpush.bf16.msrb.mxu0 %v1835_v63  ;;  %v2765_v47 = vld [vmem:[#allocation2 + $0x3b4] sm:$0xf0]  ;;  %v2159_v50 = vor.u32 %v2733_v45, %v2158_v44  ;;  %v1886_v51 = vld [vmem:[#allocation2 + $0x88] sm:$0xf] }
  0x48   :  { %924 = vmatpush.bf16.msrb.mxu1 %v1963_v3  ;;  %v2665_v52 = vld [vmem:[#allocation2 + $0x94] sm:$0xf0]  ;;  %v2014_v53 = vld [vmem:[#allocation2 + $0x188] sm:$0xf]  ;;  %v2287_v54 = vor.u32 %v2765_v47, %v2286_v46 }
  0x49   :  { %938 = vmatpush.bf16.msrb.mxu2 %v2091_v4  ;;  %v2697_v56 = vld [vmem:[#allocation2 + $0x194] sm:$0xf0]  ;;  %v2142_v57 = vld [vmem:[#allocation2 + $0x288] sm:$0xf]  ;;  %v1887_v63 = vor.u32 %v2665_v52, %v1886_v51  ;;  %v2064_v52 = vld [vmem:[#allocation2 + $0x1f8] sm:$0xf0] }
  0x4a   :  { %952 = vmatpush.bf16.msrb.mxu3 %v2219_v8  ;;  %v2729_v58 = vld [vmem:[#allocation2 + $0x294] sm:$0xf0]  ;;  %v2270_v61 = vld [vmem:[#allocation2 + $0x388] sm:$0xf]  ;;  %v2015_v1 = vor.u32 %v2697_v56, %v2014_v53  ;;  %v2739_v53 = vld [vmem:[#allocation2 + $0x2ec] sm:$0xf] }
  0x4b   :  { %911 = vmatpush.bf16.msrb.mxu0 %v1819_v15  ;;  %v2761_v62 = vld [vmem:[#allocation2 + $0x394] sm:$0xf0]  ;;  %v2143_v2 = vor.u32 %v2729_v58, %v2142_v57  ;;  %v1870_v3 = vld [vmem:[#allocation2 + $0x68] sm:$0xf]  ;;  %v2771_v58 = vld [vmem:[#allocation2 + $0x3ec] sm:$0xf] }
  0x4c   :  { %925 = vmatpush.bf16.msrb.mxu1 %v1947_v19  ;;  %v2661_v4 = vld [vmem:[#allocation2 + $0x74] sm:$0xf0]  ;;  %v1998_v5 = vld [vmem:[#allocation2 + $0x168] sm:$0xf]  ;;  %v2271_v6 = vor.u32 %v2761_v62, %v2270_v61  ;;  %v2320_v61 = vld [vmem:[#allocation2 + $0x3f8] sm:$0xf0] }
  0x4d   :  { %939 = vmatpush.bf16.msrb.mxu2 %v2075_v20  ;;  %v2693_v7 = vld [vmem:[#allocation2 + $0x174] sm:$0xf0]  ;;  %v2126_v8 = vld [vmem:[#allocation2 + $0x268] sm:$0xf]  ;;  %v1871_v12 = vor.u32 %v2661_v4, %v1870_v3  ;;  %v2671_v3 = vld [vmem:[#allocation2 + $0xcc] sm:$0xf] }
  0x4e   :  { %953 = vmatpush.bf16.msrb.mxu3 %v2203_v23  ;;  %912 = vmatmul.bf16.vlgmr.msrb.gmra.mxu0 %v3004_v59  ;;  %v2725_v9 = vld [vmem:[#allocation2 + $0x274] sm:$0xf0]  ;;  %v2254_v10 = vld [vmem:[#allocation2 + $0x368] sm:$0xf]  ;;  %v1999_v13 = vor.u32 %v2693_v7, %v1998_v5  ;;  %v1920_v4 = vld [vmem:[#allocation2 + $0xd8] sm:$0xf0] }
  0x4f   :  { %960 = vmatpush.bf16.msra.mxu0 %v1935_v24  ;;  %926 = vmatmul.bf16.vlgmr.msrb.gmra.mxu1 %v3008_v0  ;;  %v2757_v11 = vld [vmem:[#allocation2 + $0x374] sm:$0xf0]  ;;  %v2127_v14 = vor.u32 %v2725_v9, %v2126_v8  ;;  %v1854_v15 = vld [vmem:[#allocation2 + $0x48] sm:$0xf]  ;;  %v2703_v5 = vld [vmem:[#allocation2 + $0x1cc] sm:$0xf] }
  0x50   :  { %974 = vmatpush.bf16.msra.mxu1 %v2063_v25  ;;  %940 = vmatmul.bf16.vlgmr.msrb.gmra.mxu2 %v3002_v55  ;;  %v2657_v16 = vld [vmem:[#allocation2 + $0x54] sm:$0xf0]  ;;  %v1982_v17 = vld [vmem:[#allocation2 + $0x148] sm:$0xf]  ;;  %v2255_v18 = vor.u32 %v2757_v11, %v2254_v10  ;;  %v2048_v7 = vld [vmem:[#allocation2 + $0x1d8] sm:$0xf0] }
  0x51   :  { %988 = vmatpush.bf16.msra.mxu2 %v2191_v26  ;;  %954 = vmatmul.bf16.vlgmr.msrb.gmra.mxu3 %v3006_v60  ;;  %v2689_v19 = vld [vmem:[#allocation2 + $0x154] sm:$0xf0]  ;;  %v2110_v20 = vld [vmem:[#allocation2 + $0x248] sm:$0xf]  ;;  %v1855_v24 = vor.u32 %v2657_v16, %v1854_v15  ;;  %v2735_v8 = vld [vmem:[#allocation2 + $0x2cc] sm:$0xf] }
  0x52   :  { %1002 = vmatpush.bf16.msra.mxu3 %v2319_v30  ;;  %v2721_v21 = vld [vmem:[#allocation2 + $0x254] sm:$0xf0]  ;;  %v2238_v22 = vld [vmem:[#allocation2 + $0x348] sm:$0xf]  ;;  %v1983_v25 = vor.u32 %v2689_v19, %v1982_v17  ;;  %v2176_v9 = vld [vmem:[#allocation2 + $0x2d8] sm:$0xf0] }
  0x53   :  { %961 = vmatpush.bf16.msra.mxu0 %v1919_v36  ;;  %v2753_v23 = vld [vmem:[#allocation2 + $0x354] sm:$0xf0]  ;;  %v2111_v26 = vor.u32 %v2721_v21, %v2110_v20  ;;  %v1838_v27 = vld [vmem:[#allocation2 + $0x28] sm:$0xf]  ;;  %v2767_v10 = vld [vmem:[#allocation2 + $0x3cc] sm:$0xf] }
  0x54   :  { %975 = vmatpush.bf16.msra.mxu1 %v2047_v37  ;;  %v2653_v28 = vld [vmem:[#allocation2 + $0x34] sm:$0xf0]  ;;  %v1966_v29 = vld [vmem:[#allocation2 + $0x128] sm:$0xf]  ;;  %v2239_v30 = vor.u32 %v2753_v23, %v2238_v22  ;;  %v2304_v11 = vld [vmem:[#allocation2 + $0x3d8] sm:$0xf0] }
  0x55   :  { %989 = vmatpush.bf16.msra.mxu2 %v2175_v38  ;;  %v2685_v31 = vld [vmem:[#allocation2 + $0x134] sm:$0xf0]  ;;  %v2094_v32 = vld [vmem:[#allocation2 + $0x228] sm:$0xf]  ;;  %v1839_v36 = vor.u32 %v2653_v28, %v1838_v27  ;;  %v2667_v15 = vld [vmem:[#allocation2 + $0xac] sm:$0xf] }
  0x56   :  { %1003 = vmatpush.bf16.msra.mxu3 %v2303_v42  ;;  %v2717_v33 = vld [vmem:[#allocation2 + $0x234] sm:$0xf0]  ;;  %v2222_v34 = vld [vmem:[#allocation2 + $0x328] sm:$0xf]  ;;  %v1967_v39 = vor.u32 %v2685_v31, %v1966_v29  ;;  %v1904_v16 = vld [vmem:[#allocation2 + $0xb8] sm:$0xf0] }
  0x57   :  { %962 = vmatpush.bf16.msra.mxu0 %v1903_v48  ;;  %v2749_v35 = vld [vmem:[#allocation2 + $0x334] sm:$0xf0]  ;;  %v1822_v37 = vld [vmem:[#allocation2 + $0x8] sm:$0xf]  ;;  %v2095_v40 = vor.u32 %v2717_v33, %v2094_v32  ;;  %v2675_v48 = vld [vmem:[#allocation2 + $0xec] sm:$0xf] }
  0x58   :  { %976 = vmatpush.bf16.msra.mxu1 %v2031_v49  ;;  %v2649_v38 = vld [vmem:[#allocation2 + $0x14] sm:$0xf0]  ;;  %v1950_v41 = vld [vmem:[#allocation2 + $0x108] sm:$0xf]  ;;  %v2223_v44 = vor.u32 %v2749_v35, %v2222_v34  ;;  %v1936_v49 = vld [vmem:[#allocation2 + $0xf8] sm:$0xf0] }
  0x59   :  { %990 = vmatpush.bf16.msra.mxu2 %v2159_v50  ;;  %v2681_v42 = vld [vmem:[#allocation2 + $0x114] sm:$0xf0]  ;;  %v2078_v43 = vld [vmem:[#allocation2 + $0x208] sm:$0xf]  ;;  %v2707_v50 = vld [vmem:[#allocation2 + $0x1ec] sm:$0xf]  ;;  %v1823_v51 = vor.u32 %v2649_v38, %v1822_v37 }
  0x5a   :  { %1004 = vmatpush.bf16.msra.mxu3 %v2287_v54  ;;  %v2713_v45 = vld [vmem:[#allocation2 + $0x214] sm:$0xf0]  ;;  %v2206_v46 = vld [vmem:[#allocation2 + $0x308] sm:$0xf]  ;;  %v2192_v54 = vld [vmem:[#allocation2 + $0x2f8] sm:$0xf0]  ;;  %v1951_v56 = vor.u32 %v2681_v42, %v1950_v41 }
  0x5b   :  { %963 = vmatpush.bf16.msra.mxu0 %v1887_v63  ;;  %v2745_v47 = vld [vmem:[#allocation2 + $0x314] sm:$0xf0]  ;;  %v2079_v57 = vor.u32 %v2713_v45, %v2078_v43  ;;  %v1939_v63 = vor.u32 %v2675_v48, %v1936_v49  ;;  %v2699_v17 = vld [vmem:[#allocation2 + $0x1ac] sm:$0xf]  ;;  %v2032_v19 = vld [vmem:[#allocation2 + $0x1b8] sm:$0xf0] }
  0x5c   :  { %977 = vmatpush.bf16.msra.mxu1 %v2015_v1  ;;  %v2207_v62 = vor.u32 %v2745_v47, %v2206_v46  ;;  %v2067_v1 = vor.u32 %v2707_v50, %v2064_v52  ;;  %v2731_v20 = vld [vmem:[#allocation2 + $0x2ac] sm:$0xf]  ;;  %v2160_v21 = vld [vmem:[#allocation2 + $0x2b8] sm:$0xf0] }
  0x5d   :  { %991 = vmatpush.bf16.msra.mxu2 %v2143_v2  ;;  %v2195_v2 = vor.u32 %v2739_v53, %v2192_v54  ;;  %v2763_v22 = vld [vmem:[#allocation2 + $0x3ac] sm:$0xf]  ;;  %v2288_v23 = vld [vmem:[#allocation2 + $0x3b8] sm:$0xf0] }
  0x5e   :  { %1005 = vmatpush.bf16.msra.mxu3 %v2271_v6  ;;  %v2323_v6 = vor.u32 %v2771_v58, %v2320_v61  ;;  %v2663_v27 = vld [vmem:[#allocation2 + $0x8c] sm:$0xf]  ;;  %v1888_v28 = vld [vmem:[#allocation2 + $0x98] sm:$0xf0] }
  0x5f   :  { %964 = vmatpush.bf16.msra.mxu0 %v1871_v12  ;;  %v1923_v12 = vor.u32 %v2671_v3, %v1920_v4  ;;  %v2695_v29 = vld [vmem:[#allocation2 + $0x18c] sm:$0xf]  ;;  %v2016_v31 = vld [vmem:[#allocation2 + $0x198] sm:$0xf0] }
  0x60   :  { %978 = vmatpush.bf16.msra.mxu1 %v1999_v13  ;;  %v2051_v13 = vor.u32 %v2703_v5, %v2048_v7  ;;  %v2727_v32 = vld [vmem:[#allocation2 + $0x28c] sm:$0xf]  ;;  %v2144_v33 = vld [vmem:[#allocation2 + $0x298] sm:$0xf0]  ;;  %v2019_v37 = vor.u32 %v2695_v29, %v2016_v31  ;;  %v2374_v31 = vld [vmem:[#allocation4 + $0x60] sm:$0xf] }
  0x61   :  { %992 = vmatpush.bf16.msra.mxu2 %v2127_v14  ;;  %v2179_v14 = vor.u32 %v2735_v8, %v2176_v9  ;;  %v2759_v34 = vld [vmem:[#allocation2 + $0x38c] sm:$0xf]  ;;  %v2272_v35 = vld [vmem:[#allocation2 + $0x398] sm:$0xf0]  ;;  %v2147_v38 = vor.u32 %v2727_v32, %v2144_v33  ;;  %v2787_v32 = vld [vmem:[#allocation4 + $0x64] sm:$0xf0] }
  0x62   :  { %1006 = vmatpush.bf16.msra.mxu3 %v2255_v18  ;;  %v2307_v18 = vor.u32 %v2767_v10, %v2304_v11  ;;  %v2691_v41 = vld [vmem:[#allocation2 + $0x16c] sm:$0xf]  ;;  %v2275_v42 = vor.u32 %v2759_v34, %v2272_v35  ;;  %v2000_v43 = vld [vmem:[#allocation2 + $0x178] sm:$0xf0]  ;;  %v2375_v33 = vor.u32 %v2787_v32, %v2374_v31  ;;  %v2366_v34 = vld [vmem:[#allocation4 + $0x50] sm:$0xf] }
  0x63   :  { %965 = vmatpush.bf16.msra.mxu0 %v1855_v24  ;;  %v1907_v24 = vor.u32 %v2667_v15, %v1904_v16  ;;  %v2128_v45 = vld [vmem:[#allocation2 + $0x278] sm:$0xf0]  ;;  %v2755_v46 = vld [vmem:[#allocation2 + $0x36c] sm:$0xf]  ;;  %v2003_v49 = vor.u32 %v2691_v41, %v2000_v43  ;;  %v2785_v35 = vld [vmem:[#allocation4 + $0x54] sm:$0xf0] }
  0x64   :  { %979 = vmatpush.bf16.msra.mxu1 %v1983_v25  ;;  %v2035_v25 = vor.u32 %v2699_v17, %v2032_v19  ;;  %v2256_v47 = vld [vmem:[#allocation2 + $0x378] sm:$0xf0]  ;;  %v2687_v53 = vld [vmem:[#allocation2 + $0x14c] sm:$0xf]  ;;  %v2781_v41 = vld [vmem:[#allocation4 + $0x34] sm:$0xf0] }
  0x65   :  { %993 = vmatpush.bf16.msra.mxu2 %v2111_v26  ;;  %v2163_v26 = vor.u32 %v2731_v20, %v2160_v21  ;;  %v1856_v52 = vld [vmem:[#allocation2 + $0x58] sm:$0xf0]  ;;  %v2259_v54 = vor.u32 %v2755_v46, %v2256_v47  ;;  %v2751_v61 = vld [vmem:[#allocation2 + $0x34c] sm:$0xf]  ;;  %v2342_v43 = vld [vmem:[#allocation4 + $0x20] sm:$0xf] }
  0x66   :  { %1007 = vmatpush.bf16.msra.mxu3 %v2239_v30  ;;  %v2291_v30 = vor.u32 %v2763_v22, %v2288_v23  ;;  %v2112_v58 = vld [vmem:[#allocation2 + $0x258] sm:$0xf0]  ;;  %v2651_v3 = vld [vmem:[#allocation2 + $0x2c] sm:$0xf]  ;;  %v2334_v46 = vld [vmem:[#allocation4 + $0x10] sm:$0xf] }
  0x67   :  { %966 = vmatpush.bf16.msra.mxu0 %v1839_v36  ;;  %v1891_v36 = vor.u32 %v2663_v27, %v1888_v28  ;;  %v1840_v4 = vld [vmem:[#allocation2 + $0x38] sm:$0xf0]  ;;  %v2683_v5 = vld [vmem:[#allocation2 + $0x12c] sm:$0xf] }
  0x68   :  { %980 = vmatpush.bf16.msra.mxu1 %v1967_v39  ;;  %v2659_v39 = vld [vmem:[#allocation2 + $0x6c] sm:$0xf]  ;;  %v1968_v7 = vld [vmem:[#allocation2 + $0x138] sm:$0xf0] }
  0x69   :  { %994 = vmatpush.bf16.msra.mxu2 %v2095_v40  ;;  %v1872_v40 = vld [vmem:[#allocation2 + $0x78] sm:$0xf0]  ;;  %v2715_v8 = vld [vmem:[#allocation2 + $0x22c] sm:$0xf] }
  0x6a   :  { %1008 = vmatpush.bf16.msra.mxu3 %v2223_v44  ;;  %v2723_v44 = vld [vmem:[#allocation2 + $0x26c] sm:$0xf]  ;;  %v1875_v48 = vor.u32 %v2659_v39, %v1872_v40  ;;  %v2096_v9 = vld [vmem:[#allocation2 + $0x238] sm:$0xf0]  ;;  %v2350_v40 = vld [vmem:[#allocation4 + $0x30] sm:$0xf] }
  0x6b   :  { %967 = vmatpush.bf16.msra.mxu0 %v1823_v51  ;;  %v2131_v50 = vor.u32 %v2723_v44, %v2128_v45  ;;  %v2655_v51 = vld [vmem:[#allocation2 + $0x4c] sm:$0xf]  ;;  %v2224_v11 = vld [vmem:[#allocation2 + $0x338] sm:$0xf0]  ;;  %v2099_v15 = vor.u32 %v2715_v8, %v2096_v9  ;;  %v2446_v45 = vld [vmem:[#allocation4 + $0xf0] sm:$0xf] }
  0x6c   :  { %981 = vmatpush.bf16.msra.mxu1 %v1951_v56  ;;  %v1984_v56 = vld [vmem:[#allocation2 + $0x158] sm:$0xf0]  ;;  %v2747_v10 = vld [vmem:[#allocation2 + $0x32c] sm:$0xf]  ;;  %v2414_v8 = vld [vmem:[#allocation4 + $0xb0] sm:$0xf] }
  0x6d   :  { %995 = vmatpush.bf16.msra.mxu2 %v2079_v57  ;;  %v2719_v57 = vld [vmem:[#allocation2 + $0x24c] sm:$0xf]  ;;  %v1824_v16 = vld [vmem:[#allocation2 + $0x18] sm:$0xf0]  ;;  %v2227_v19 = vor.u32 %v2747_v10, %v2224_v11  ;;  %v2797_v9 = vld [vmem:[#allocation4 + $0xb4] sm:$0xf0] }
  0x6e   :  { %1009 = vmatpush.bf16.msra.mxu3 %v2207_v62  ;;  %968 = vmatmul.bf16.vlgmr.msra.gmra.mxu0 %v3004_v59  ;;  %v2240_v62 = vld [vmem:[#allocation2 + $0x358] sm:$0xf0]  ;;  %v2679_v17 = vld [vmem:[#allocation2 + $0x10c] sm:$0xf]  ;;  %v2415_v10 = vor.u32 %v2797_v9, %v2414_v8  ;;  %v3029_v11 = vld [vmem:[%s3094_s2] sm:$0xf] }
  0x6f   :  { %1016 = vmatpush.bf16.msrb.mxu0 %v1939_v63  ;;  %982 = vmatmul.bf16.vlgmr.msra.gmra.mxu1 %v3008_v0  ;;  %v1859_v63 = vor.u32 %v2655_v51, %v1856_v52  ;;  %v2711_v20 = vld [vmem:[#allocation2 + $0x20c] sm:$0xf]  ;;  %v2080_v21 = vld [vmem:[#allocation2 + $0x218] sm:$0xf0]  ;;  %v2775_v51 = vld [vmem:[#allocation4 + $0x4] sm:$0xf0] }
  0x70   :  { %1030 = vmatpush.bf16.msrb.mxu1 %v2067_v1  ;;  %996 = vmatmul.bf16.vlgmr.msra.gmra.mxu2 %v3002_v55  ;;  %v1987_v1 = vor.u32 %v2687_v53, %v1984_v56  ;;  %v2743_v22 = vld [vmem:[#allocation2 + $0x30c] sm:$0xf]  ;;  %v2208_v23 = vld [vmem:[#allocation2 + $0x318] sm:$0xf0]  ;;  %v2083_v28 = vor.u32 %v2711_v20, %v2080_v21  ;;  %v2788_v53 = vld [vmem:[#allocation4 + $0x74] sm:$0xf] }
  0x71   :  { %1044 = vmatpush.bf16.msrb.mxu2 %v2195_v2  ;;  %1010 = vmatmul.bf16.vlgmr.msra.gmra.mxu3 %v3006_v60  ;;  %v2115_v2 = vor.u32 %v2719_v57, %v2112_v58  ;;  %v2211_v29 = vor.u32 %v2743_v22, %v2208_v23  ;;  %v2430_v57 = vld [vmem:[#allocation4 + $0xd0] sm:$0xf]  ;;  %v2801_v58 = vld [vmem:[#allocation4 + $0xd4] sm:$0xf0]  ;;  %v2780_v21 = vld [vmem:[#allocation4 + $0x34] sm:$0xf] }
  0x72   :  { %1058 = vmatpush.bf16.msrb.mxu3 %v2323_v6  ;;  %v2243_v6 = vor.u32 %v2751_v61, %v2240_v62  ;;  %v2431_v62 = vor.u32 %v2801_v58, %v2430_v57  ;;  %v2352_v22 = vld [vmem:[#allocation4 + $0x38] sm:$0xf0]  ;;  %v2344_v31 = vld [vmem:[#allocation4 + $0x28] sm:$0xf0] }
  0x73   :  { %1017 = vmatpush.bf16.msrb.mxu0 %v1923_v12  ;;  %v1843_v12 = vor.u32 %v2651_v3, %v1840_v4  ;;  %v2799_v3 = vld [vmem:[#allocation4 + $0xc4] sm:$0xf0] }
  0x74   :  { %1031 = vmatpush.bf16.msrb.mxu1 %v2051_v13  ;;  %v2647_v13 = vld [vmem:[#allocation2 + $0xc] sm:$0xf] }
  0x75   :  { %1045 = vmatpush.bf16.msrb.mxu2 %v2179_v14  ;;  %v1971_v14 = vor.u32 %v2683_v5, %v1968_v7  ;;  %v2784_v5 = vld [vmem:[#allocation4 + $0x54] sm:$0xf]  ;;  %v2368_v7 = vld [vmem:[#allocation4 + $0x58] sm:$0xf0] }
  0x76   :  { %1059 = vmatpush.bf16.msrb.mxu3 %v2307_v18  ;;  %v1952_v18 = vld [vmem:[#allocation2 + $0x118] sm:$0xf0] }
  0x77   :  { %1018 = vmatpush.bf16.msrb.mxu0 %v1907_v24  ;;  %v2382_v24 = vld [vmem:[#allocation4 + $0x70] sm:$0xf]  ;;  %v1955_v27 = vor.u32 %v2679_v17, %v1952_v18  ;;  %v200_v17 = vperm.slane %v3029_v11, 0 }
  0x78   :  { %1032 = vmatpush.bf16.msrb.mxu1 %v2035_v25  ;;  %v2789_v25 = vld [vmem:[#allocation4 + $0x74] sm:$0xf0] }
  0x79   :  { %1046 = vmatpush.bf16.msrb.mxu2 %v2163_v26  ;;  %v1827_v26 = vor.u32 %v2647_v13, %v1824_v16  ;;  %v2795_v13 = vld [vmem:[#allocation4 + $0xa4] sm:$0xf0]  ;;  %v2360_v16 = vld [vmem:[#allocation4 + $0x48] sm:$0xf0] }
  0x7a   :  { %1060 = vmatpush.bf16.msrb.mxu3 %v2291_v30  ;;  %v2383_v30 = vor.u32 %v2789_v25, %v2382_v24  ;;  %v2398_v25 = vld [vmem:[#allocation4 + $0x90] sm:$0xf] }
  0x7b   :  { %1019 = vmatpush.bf16.msrb.mxu0 %v1891_v36  ;;  %v2367_v36 = vor.u32 %v2785_v35, %v2366_v34  ;;  %v2390_v35 = vld [vmem:[#allocation4 + $0x80] sm:$0xf] }
  0x7c   :  { %1033 = vmatpush.bf16.msrb.mxu1 %v2019_v37  ;;  %v2358_v37 = vld [vmem:[#allocation4 + $0x40] sm:$0xf] }
  0x7d   :  { %1047 = vmatpush.bf16.msrb.mxu2 %v2147_v38  ;;  %v2783_v38 = vld [vmem:[#allocation4 + $0x44] sm:$0xf0] }
  0x7e   :  { %1061 = vmatpush.bf16.msrb.mxu3 %v2275_v42  ;;  %v2359_v39 = vor.u32 %v2783_v38, %v2358_v37  ;;  %v2351_v42 = vor.u32 %v2781_v41, %v2350_v40  ;;  %v2776_v38 = vld [vmem:[#allocation4 + $0x14] sm:$0xf]  ;;  %v2510_v40 = vld [vmem:[#allocation4 + $0x170] sm:$0xf]  ;;  %v2821_v41 = vld [vmem:[#allocation4 + $0x174] sm:$0xf0] }
  0x7f   :  { %1020 = vmatpush.bf16.msrb.mxu0 %v1875_v48  ;;  %v2438_v48 = vld [vmem:[#allocation4 + $0xe0] sm:$0xf] }
  0x80   :  { %1034 = vmatpush.bf16.msrb.mxu1 %v2003_v49  ;;  %v2803_v49 = vld [vmem:[#allocation4 + $0xe4] sm:$0xf0] }
  0x81   :  { %1048 = vmatpush.bf16.msrb.mxu2 %v2131_v50  ;;  %v2326_v50 = vld [vmem:[#allocation4] sm:$0xf]  ;;  %v2439_v52 = vor.u32 %v2803_v49, %v2438_v48 }
  0x82   :  { %1062 = vmatpush.bf16.msrb.mxu3 %v2259_v54  ;;  %v2384_v54 = vld [vmem:[#allocation4 + $0x78] sm:$0xf0]  ;;  %v2327_v56 = vor.u32 %v2775_v51, %v2326_v50  ;;  %v2502_v49 = vld [vmem:[#allocation4 + $0x160] sm:$0xf]  ;;  %v2819_v50 = vld [vmem:[#allocation4 + $0x164] sm:$0xf0] }
  0x83   :  { %1021 = vmatpush.bf16.msrb.mxu0 %v1859_v63  ;;  %v2387_v61 = vor.u32 %v2788_v53, %v2384_v54  ;;  %v2786_v63 = vld [vmem:[#allocation4 + $0x64] sm:$0xf]  ;;  %v2328_v53 = vld [vmem:[#allocation4 + $0x8] sm:$0xf0]  ;;  %v2503_v54 = vor.u32 %v2819_v50, %v2502_v49 }
  0x84   :  { %1035 = vmatpush.bf16.msrb.mxu1 %v1987_v1  ;;  %v2376_v1 = vld [vmem:[#allocation4 + $0x68] sm:$0xf0]  ;;  %v2802_v51 = vld [vmem:[#allocation4 + $0xe4] sm:$0xf] }
  0x85   :  { %1049 = vmatpush.bf16.msrb.mxu2 %v2115_v2  ;;  %v2422_v2 = vld [vmem:[#allocation4 + $0xc0] sm:$0xf]  ;;  %v2379_v4 = vor.u32 %v2786_v63, %v2376_v1 }
  0x86   :  { %1063 = vmatpush.bf16.msrb.mxu3 %v2243_v6  ;;  %v2423_v6 = vor.u32 %v2799_v3, %v2422_v2  ;;  %v2494_v2 = vld [vmem:[#allocation4 + $0x150] sm:$0xf]  ;;  %v2817_v3 = vld [vmem:[#allocation4 + $0x154] sm:$0xf0] }
  0x87   :  { %1022 = vmatpush.bf16.msrb.mxu0 %v1843_v12  ;;  %v2406_v12 = vld [vmem:[#allocation4 + $0xa0] sm:$0xf] }
  0x88   :  { %1036 = vmatpush.bf16.msrb.mxu1 %v1971_v14  ;;  %v2371_v14 = vor.u32 %v2784_v5, %v2368_v7  ;;  %v2407_v18 = vor.u32 %v2795_v13, %v2406_v12  ;;  %v2432_v7 = vld [vmem:[#allocation4 + $0xd8] sm:$0xf0]  ;;  %v2486_v12 = vld [vmem:[#allocation4 + $0x140] sm:$0xf]  ;;  %v2815_v13 = vld [vmem:[#allocation4 + $0x144] sm:$0xf0] }
  0x89   :  { %1050 = vmatpush.bf16.msrb.mxu2 %v2099_v15  ;;  %v2782_v15 = vld [vmem:[#allocation4 + $0x44] sm:$0xf] }
  0x8a   :  { %1064 = vmatpush.bf16.msrb.mxu3 %v2227_v19  ;;  %v2363_v19 = vor.u32 %v2782_v15, %v2360_v16  ;;  %v2487_v16 = vor.u32 %v2815_v13, %v2486_v12  ;;  %v2816_v12 = vld [vmem:[#allocation4 + $0x154] sm:$0xf] }
  0x8b   :  { %1023 = vmatpush.bf16.msrb.mxu0 %v1827_v26  ;;  %v2793_v26 = vld [vmem:[#allocation4 + $0x94] sm:$0xf0] }
  0x8c   :  { %1037 = vmatpush.bf16.msrb.mxu1 %v1955_v27  ;;  %v2399_v27 = vor.u32 %v2793_v26, %v2398_v25  ;;  %v2470_v25 = vld [vmem:[#allocation4 + $0x120] sm:$0xf]  ;;  %v2811_v26 = vld [vmem:[#allocation4 + $0x124] sm:$0xf0] }
  0x8d   :  { %1051 = vmatpush.bf16.msrb.mxu2 %v2083_v28 }
  0x8e   :  { %1065 = vmatpush.bf16.msrb.mxu3 %v2211_v29  ;;  %1024 = vmatmul.bf16.vlgmr.msrb.gmra.mxu0 %v3004_v59  ;;  %v2779_v59 = vld [vmem:[#allocation4 + $0x24] sm:$0xf0]  ;;  %v2355_v29 = vor.u32 %v2780_v21, %v2352_v22  ;;  %v2813_v21 = vld [vmem:[#allocation4 + $0x134] sm:$0xf0]  ;;  %v2796_v22 = vld [vmem:[#allocation4 + $0xb4] sm:$0xf] }
  0x8f   :  { %1482 = vmatpush.bf16.msra.mxu0 %v2383_v30  ;;  %1038 = vmatmul.bf16.vlgmr.msrb.gmra.mxu1 %v3008_v0  ;;  %v2343_v44 = vor.u32 %v2779_v59, %v2342_v43  ;;  %v2805_v0 = vld [vmem:[#allocation4 + $0xf4] sm:$0xf0]  ;;  %v2778_v30 = vld [vmem:[#allocation4 + $0x24] sm:$0xf]  ;;  %v2336_v43 = vld [vmem:[#allocation4 + $0x18] sm:$0xf0]  ;;  %v2511_v59 = vor.u32 %v2821_v41, %v2510_v40 }
  0x90   :  { %1052 = vmatmul.bf16.vlgmr.msrb.gmra.mxu2 %v3002_v55  ;;  %v2777_v55 = vld [vmem:[#allocation4 + $0x14] sm:$0xf0]  ;;  %v2447_v47 = vor.u32 %v2805_v0, %v2446_v45  ;;  %v2347_v37 = vor.u32 %v2778_v30, %v2344_v31  ;;  %v2448_v45 = vld [vmem:[#allocation4 + $0xf8] sm:$0xf0]  ;;  %v2339_v48 = vor.u32 %v2776_v38, %v2336_v43  ;;  %v2471_v30 = vor.u32 %v2811_v26, %v2470_v25  ;;  %v2792_v38 = vld [vmem:[#allocation4 + $0x94] sm:$0xf] }
  0x91   :  { %1066 = vmatmul.bf16.vlgmr.msrb.gmra.mxu3 %v3006_v60  ;;  %v2335_v60 = vor.u32 %v2777_v55, %v2334_v46  ;;  %1510 = vmatpush.bf16.msra.mxu2 %v2511_v59  ;;  %v201_v31 = vperm.slane %v3029_v11, 1  ;;  %v2400_v40 = vld [vmem:[#allocation4 + $0x98] sm:$0xf0]  ;;  %v2454_v59 = vld [vmem:[#allocation4 + $0x100] sm:$0xf] }
  0x92   :  { %1496 = vmatpush.bf16.msra.mxu1 %v2447_v47 }
  0x93   :  { %1483 = vmatpush.bf16.msra.mxu0 %v2375_v33 }
  0x95   :  { %1511 = vmatpush.bf16.msra.mxu2 %v2503_v54 }
  0x96   :  { %1497 = vmatpush.bf16.msra.mxu1 %v2439_v52  ;;  %v2774_v52 = vld [vmem:[#allocation4 + $0x4] sm:$0xf] }
  0x97   :  { %1484 = vmatpush.bf16.msra.mxu0 %v2367_v36  ;;  %v2791_v36 = vld [vmem:[#allocation4 + $0x84] sm:$0xf0]  ;;  %v2331_v1 = vor.u32 %v2774_v52, %v2328_v53  ;;  %v2512_v52 = vld [vmem:[#allocation4 + $0x178] sm:$0xf0] }
  0x9a   :  { %1498 = vmatpush.bf16.msra.mxu1 %v2431_v62 }
  0x9b   :  { %1485 = vmatpush.bf16.msra.mxu0 %v2359_v39  ;;  %v2391_v39 = vor.u32 %v2791_v36, %v2390_v35  ;;  %v2462_v36 = vld [vmem:[#allocation4 + $0x110] sm:$0xf] }
  0x9e   :  { %1499 = vmatpush.bf16.msra.mxu1 %v2423_v6  ;;  %v2495_v6 = vor.u32 %v2817_v3, %v2494_v2  ;;  %v2818_v2 = vld [vmem:[#allocation4 + $0x164] sm:$0xf]  ;;  %v2504_v3 = vld [vmem:[#allocation4 + $0x168] sm:$0xf0] }
  0x9f   :  { %1486 = vmatpush.bf16.msra.mxu0 %v2351_v42 }
  0xa0   :  { %1512 = vmatpush.bf16.msra.mxu2 %v2495_v6 }
  0xa2   :  { %1500 = vmatpush.bf16.msra.mxu1 %v2415_v10 }
  0xa3   :  { %1487 = vmatpush.bf16.msra.mxu0 %v2343_v44  ;;  %v2804_v44 = vld [vmem:[#allocation4 + $0xf4] sm:$0xf] }
  0xa4   :  { %v2451_v55 = vor.u32 %v2804_v44, %v2448_v45  ;;  %1513 = vmatpush.bf16.msra.mxu2 %v2487_v16  ;;  %v2807_v44 = vld [vmem:[#allocation4 + $0x104] sm:$0xf0]  ;;  %v2790_v45 = vld [vmem:[#allocation4 + $0x84] sm:$0xf] }
  0xa6   :  { %1501 = vmatpush.bf16.msra.mxu1 %v2407_v18 }
  0xa7   :  { %1488 = vmatpush.bf16.msra.mxu0 %v2335_v60 }
  0xaa   :  { %1502 = vmatpush.bf16.msra.mxu1 %v2399_v27 }
  0xab   :  { %1489 = vmatpush.bf16.msra.mxu0 %v2327_v56  ;;  %v2440_v56 = vld [vmem:[#allocation4 + $0xe8] sm:$0xf0] }
  0xac   :  { %v871_v24 = vpop.f32.mrf.mxu1  ;;  %v2443_v58 = vor.u32 %v2802_v51, %v2440_v56  ;;  %v2820_v51 = vld [vmem:[#allocation4 + $0x174] sm:$0xf] }
  0xad   :  { %v2515_v54 = vor.u32 %v2820_v51, %v2512_v52  ;;  %v2456_v51 = vld [vmem:[#allocation4 + $0x108] sm:$0xf0]  ;;  %v2836_v52 = vld [vmem:[#allocation4 + $0x1f4] sm:$0xf] }
  0xae   :  { %v857_v20 = vpop.f32.mrf.mxu0  ;;  %1503 = vmatpush.bf16.msra.mxu1 %v2391_v39 }
  0xaf   :  { %1538 = vmatpush.bf16.msrb.mxu0 %v2387_v61  ;;  %v858_v23 = vadd.f32 %v857_v20, %v200_v17  ;;  %v2478_v20 = vld [vmem:[#allocation4 + $0x130] sm:$0xf] }
  0xb1   :  { %v872_v28 = vadd.f32 %v871_v24, %v858_v23  ;;  %v2479_v23 = vor.u32 %v2813_v21, %v2478_v20  ;;  %v2416_v24 = vld [vmem:[#allocation4 + $0xb8] sm:$0xf0]  ;;  %v2831_v20 = vld [vmem:[#allocation4 + $0x1c4] sm:$0xf0] }
  0xb2   :  { %1552 = vmatpush.bf16.msrb.mxu1 %v2451_v55  ;;  %v2419_v27 = vor.u32 %v2796_v22, %v2416_v24  ;;  %v2455_v55 = vor.u32 %v2807_v44, %v2454_v59  ;;  %v2814_v22 = vld [vmem:[#allocation4 + $0x144] sm:$0xf]  ;;  %v2464_v44 = vld [vmem:[#allocation4 + $0x118] sm:$0xf0] }
  0xb3   :  { %1539 = vmatpush.bf16.msrb.mxu0 %v2379_v4  ;;  %v885_v32 = vpop.f32.mrf.mxu2  ;;  %v2800_v4 = vld [vmem:[#allocation4 + $0xd4] sm:$0xf]  ;;  %1514 = vmatpush.bf16.msra.mxu2 %v2479_v23  ;;  %v2488_v23 = vld [vmem:[#allocation4 + $0x148] sm:$0xf0] }
  0xb4   :  { %v886_v33 = vadd.f32 %v885_v32, %v872_v28  ;;  %v873_v46 = vpop.f32.mrf.mxu1  ;;  %v2435_v8 = vor.u32 %v2800_v4, %v2432_v7  ;;  %v2794_v28 = vld [vmem:[#allocation4 + $0xa4] sm:$0xf]  ;;  %v2507_v4 = vor.u32 %v2818_v2, %v2504_v3  ;;  %v2491_v25 = vor.u32 %v2814_v22, %v2488_v23  ;;  %v2568_v2 = vld [vmem:[#allocation4 + $0x1e8] sm:$0xf0]  ;;  %v2544_v22 = vld [vmem:[#allocation4 + $0x1b8] sm:$0xf0] }
  0xb6   :  { %v899_v34 = vpop.f32.mrf.mxu3  ;;  %v859_v42 = vpop.f32.mrf.mxu0  ;;  %1553 = vmatpush.bf16.msrb.mxu1 %v2443_v58 }
  0xb7   :  { %1540 = vmatpush.bf16.msrb.mxu0 %v2371_v14  ;;  %v860_v0 = vadd.f32 %v859_v42, %v200_v17  ;;  %v900_v47 = vadd.f32 %v899_v34, %v886_v33  ;;  %v2798_v14 = vld [vmem:[#allocation4 + $0xc4] sm:$0xf]  ;;  %v2424_v17 = vld [vmem:[#allocation4 + $0xc8] sm:$0xf0]  ;;  %1515 = vmatpush.bf16.msra.mxu2 %v2471_v30  ;;  %v2403_v42 = vor.u32 %v2792_v38, %v2400_v40  ;;  %v2526_v40 = vld [vmem:[#allocation4 + $0x190] sm:$0xf] }
  0xb8   :  { %v2427_v18 = vor.u32 %v2798_v14, %v2424_v17  ;;  %v2496_v14 = vld [vmem:[#allocation4 + $0x158] sm:$0xf0]  ;;  %v2472_v38 = vld [vmem:[#allocation4 + $0x128] sm:$0xf0] }
  0xb9   :  { %v874_v60 = vadd.f32 %v873_v46, %v860_v0  ;;  %v1072_v61 = vmul.f32 0.2, %v900_v47  ;;  %v2499_v16 = vor.u32 %v2816_v12, %v2496_v14 }
  0xba   :  { %1554 = vmatpush.bf16.msrb.mxu1 %v2435_v8 }
  0xbb   :  { %1541 = vmatpush.bf16.msrb.mxu0 %v2363_v19  ;;  %v887_v57 = vpop.f32.mrf.mxu2  ;;  %v1080_v9 = vmax.f32 %v900_v47, %v1072_v61  ;;  %v2392_v47 = vld [vmem:[#allocation4 + $0x88] sm:$0xf0]  ;;  %v2566_v61 = vld [vmem:[#allocation4 + $0x1e0] sm:$0xf] }
  0xbc   :  { %v888_v62 = vadd.f32 %v887_v57, %v874_v60  ;;  %v2574_v60 = vld [vmem:[#allocation4 + $0x1f0] sm:$0xf]  ;;  %v2395_v49 = vor.u32 %v2790_v45, %v2392_v47  ;;  %v2518_v47 = vld [vmem:[#allocation4 + $0x180] sm:$0xf] }
  0xbe   :  { %v901_v63 = vpop.f32.mrf.mxu3  ;;  %1555 = vmatpush.bf16.msrb.mxu1 %v2427_v18 }
  0xbf   :  { %1542 = vmatpush.bf16.msrb.mxu0 %v2355_v29  ;;  %v902_v5 = vadd.f32 %v901_v63, %v888_v62  ;;  %v2408_v29 = vld [vmem:[#allocation4 + $0xa8] sm:$0xf0]  ;;  %v2835_v62 = vld [vmem:[#allocation4 + $0x1e4] sm:$0xf0] }
  0xc0   :  { %v2411_v32 = vor.u32 %v2794_v28, %v2408_v29  ;;  %v2829_v28 = vld [vmem:[#allocation4 + $0x1b4] sm:$0xf0]  ;;  %v2812_v29 = vld [vmem:[#allocation4 + $0x134] sm:$0xf] }
  0xc1   :  { %v1076_v10 = vmul.f32 0.2, %v902_v5 }
  0xc2   :  { %1556 = vmatpush.bf16.msrb.mxu1 %v2419_v27  ;;  %v2542_v27 = vld [vmem:[#allocation4 + $0x1b0] sm:$0xf] }
  0xc3   :  { %1543 = vmatpush.bf16.msrb.mxu0 %v2347_v37  ;;  %v1084_v15 = vmax.f32 %v902_v5, %v1076_v10  ;;  %v2809_v37 = vld [vmem:[#allocation4 + $0x114] sm:$0xf0]  ;;  %v2543_v30 = vor.u32 %v2829_v28, %v2542_v27  ;;  %v2824_v28 = vld [vmem:[#allocation4 + $0x194] sm:$0xf] }
  0xc4   :  { %v2463_v39 = vor.u32 %v2809_v37, %v2462_v36  ;;  %v2833_v10 = vld [vmem:[#allocation4 + $0x1d4] sm:$0xf0]  ;;  %v202_v36 = vperm.slane %v3029_v11, 2 }
  0xc5   :  { %v1088_v19 = vpack.c.bf16 %v1084_v15, %v1080_v9  ;;  %v2558_v9 = vld [vmem:[#allocation4 + $0x1d0] sm:$0xf] }
  0xc6   :  { %1557 = vmatpush.bf16.msrb.mxu1 %v2411_v32  ;;  %1516 = vmatpush.bf16.msra.mxu2 %v2463_v39  ;;  %v2559_v13 = vor.u32 %v2833_v10, %v2558_v9 }
  0xc7   :  { %1544 = vmatpush.bf16.msrb.mxu0 %v2339_v48  ;;  %v2837_v48 = vld [vmem:[#allocation4 + $0x1f4] sm:$0xf0] }
  0xc8   :  { %1490 = vmatmul.bf16.vlgmr.msra.gmra.mxu0 %v1088_v19  ;;  %v2575_v50 = vor.u32 %v2837_v48, %v2574_v60  ;;  %v2823_v60 = vld [vmem:[#allocation4 + $0x184] sm:$0xf0]  ;;  %v2806_v48 = vld [vmem:[#allocation4 + $0x104] sm:$0xf] }
  0xca   :  { %1558 = vmatpush.bf16.msrb.mxu1 %v2403_v42  ;;  %1517 = vmatpush.bf16.msra.mxu2 %v2455_v55  ;;  %v2808_v42 = vld [vmem:[#allocation4 + $0x114] sm:$0xf] }
  0xcb   :  { %1545 = vmatpush.bf16.msrb.mxu0 %v2331_v1  ;;  %v913_v33 = vpop.f32.mrf.mxu0  ;;  %1524 = vmatpush.bf16.msra.mxu3 %v2575_v50  ;;  %v2567_v1 = vor.u32 %v2835_v62, %v2566_v61  ;;  %v2519_v50 = vor.u32 %v2823_v60, %v2518_v47 }
  0xcc   :  { %v914_v34 = vadd.f32 %v913_v33, %v201_v31  ;;  %v927_v35 = vpop.f32.mrf.mxu1  ;;  %v2534_v33 = vld [vmem:[#allocation4 + $0x1a0] sm:$0xf] }
  0xce   :  { %v928_v41 = vadd.f32 %v927_v35, %v914_v34  ;;  %1559 = vmatpush.bf16.msrb.mxu1 %v2395_v49  ;;  %1566 = vmatpush.bf16.msrb.mxu2 %v2515_v54  ;;  %v2827_v34 = vld [vmem:[#allocation4 + $0x1a4] sm:$0xf0]  ;;  %v2810_v35 = vld [vmem:[#allocation4 + $0x124] sm:$0xf] }
  0xcf   :  { %1525 = vmatpush.bf16.msra.mxu3 %v2567_v1  ;;  %v2535_v37 = vor.u32 %v2827_v34, %v2534_v33  ;;  %v2475_v39 = vor.u32 %v2810_v35, %v2472_v38  ;;  %v2834_v1 = vld [vmem:[#allocation4 + $0x1e4] sm:$0xf]  ;;  %v2520_v34 = vld [vmem:[#allocation4 + $0x188] sm:$0xf0] }
  0xd0   :  { %v2822_v33 = vld [vmem:[#allocation4 + $0x184] sm:$0xf] }
  0xd2   :  { %1567 = vmatpush.bf16.msrb.mxu2 %v2507_v4  ;;  %v2571_v4 = vor.u32 %v2834_v1, %v2568_v2  ;;  %v2838_v1 = vld [vmem:[%s3097_s5] sm:$0xff] }
  0xd3   :  { %v941_v43 = vpop.f32.mrf.mxu2  ;;  %v915_v53 = vpop.f32.mrf.mxu0  ;;  %1526 = vmatpush.bf16.msra.mxu3 %v2559_v13  ;;  %v2850_v2 = vld [vmem:[%s3097_s5 + $0x60] sm:$0xff] }
  0xd4   :  { %v942_v0 = vadd.f32 %v941_v43, %v928_v41  ;;  %v955_v46 = vpop.f32.mrf.mxu3  ;;  %v916_v57 = vadd.f32 %v915_v53, %v201_v31  ;;  %v929_v58 = vpop.f32.mrf.mxu1  ;;  %v2480_v31 = vld [vmem:[#allocation4 + $0x138] sm:$0xf0]  ;;  %v2825_v41 = vld [vmem:[#allocation4 + $0x194] sm:$0xf0] }
  0xd5   :  { %v2483_v32 = vor.u32 %v2812_v29, %v2480_v31  ;;  %v2527_v59 = vor.u32 %v2825_v41, %v2526_v40  ;;  %v2576_v53 = vld [vmem:[#allocation4 + $0x1f8] sm:$0xf0] }
  0xd6   :  { %v956_v56 = vadd.f32 %v955_v46, %v942_v0  ;;  %v930_v63 = vadd.f32 %v929_v58, %v916_v57  ;;  %1568 = vmatpush.bf16.msrb.mxu2 %v2499_v16  ;;  %v2467_v46 = vor.u32 %v2808_v42, %v2464_v44  ;;  %v2459_v57 = vor.u32 %v2806_v48, %v2456_v51  ;;  %v2552_v16 = vld [vmem:[#allocation4 + $0x1c8] sm:$0xf0]  ;;  %v2528_v29 = vld [vmem:[#allocation4 + $0x198] sm:$0xf0] }
  0xd7   :  { %v2579_v58 = vor.u32 %v2836_v52, %v2576_v53  ;;  %v2845_v51 = vld [vmem:[%s3097_s5 + $0x38] sm:$0xff]  ;;  %v2844_v52 = vld [vmem:[%s3097_s5 + $0x30] sm:$0xff]  ;;  %v2843_v53 = vld [vmem:[%s3097_s5 + $0x28] sm:$0xff] }
  0xd8   :  { %1546 = vmatmul.bf16.vlgmr.msrb.gmra.mxu0 %v1088_v19  ;;  %v1073_v5 = vmul.f32 0.2, %v956_v56  ;;  %v2550_v19 = vld [vmem:[#allocation4 + $0x1c0] sm:$0xf] }
  0xd9   :  { %v2551_v21 = vor.u32 %v2831_v20, %v2550_v19  ;;  %1736 = vmatpush.bf16.msra.mxu0 %v2845_v51 }
  0xda   :  { %v1081_v17 = vmax.f32 %v956_v56, %v1073_v5  ;;  %1569 = vmatpush.bf16.msrb.mxu2 %v2491_v25  ;;  %v2826_v25 = vld [vmem:[#allocation4 + $0x1a4] sm:$0xf] }
  0xdb   :  { %v943_v6 = vpop.f32.mrf.mxu2  ;;  %1527 = vmatpush.bf16.msra.mxu3 %v2551_v21  ;;  %v2828_v21 = vld [vmem:[#allocation4 + $0x1b4] sm:$0xf] }
  0xdc   :  { %v944_v7 = vadd.f32 %v943_v6, %v930_v63  ;;  %v957_v8 = vpop.f32.mrf.mxu3 }
  0xdd   :  { %1737 = vmatpush.bf16.msra.mxu0 %v2844_v52 }
  0xde   :  { %v958_v15 = vadd.f32 %v957_v8, %v944_v7  ;;  %1570 = vmatpush.bf16.msrb.mxu2 %v2483_v32  ;;  %v2832_v7 = vld [vmem:[#allocation4 + $0x1d4] sm:$0xf]  ;;  %v2560_v8 = vld [vmem:[#allocation4 + $0x1d8] sm:$0xf0]  ;;  %v2531_v32 = vor.u32 %v2824_v28, %v2528_v29 }
  0xdf   :  { %1528 = vmatpush.bf16.msra.mxu3 %v2543_v30  ;;  %v2563_v13 = vor.u32 %v2832_v7, %v2560_v8  ;;  %v203_v30 = vperm.slane %v3029_v11, 3  ;;  %v1156_v8 = vld [vmem:[%s3096_s4] sm:$0x3] }
  0xe0   :  { %v1077_v18 = vmul.f32 0.2, %v958_v15 }
  0xe1   :  { %1738 = vmatpush.bf16.msra.mxu0 %v2843_v53 }
  0xe2   :  { %v1085_v24 = vmax.f32 %v958_v15, %v1077_v18  ;;  %1571 = vmatpush.bf16.msrb.mxu2 %v2475_v39  ;;  %v2830_v15 = vld [vmem:[#allocation4 + $0x1c4] sm:$0xf] }
  0xe3   :  { %1529 = vmatpush.bf16.msra.mxu3 %v2535_v37  ;;  %v2555_v19 = vor.u32 %v2830_v15, %v2552_v16  ;;  %v2523_v37 = vor.u32 %v2822_v33, %v2520_v34 }
  0xe4   :  { %v1089_v26 = vpack.c.bf16 %v1085_v24, %v1081_v17  ;;  %v2547_v24 = vor.u32 %v2828_v21, %v2544_v22 }
  0xe6   :  { %1504 = vmatmul.bf16.vlgmr.msra.gmra.mxu1 %v1089_v26  ;;  %1572 = vmatpush.bf16.msrb.mxu2 %v2467_v46 }
  0xe7   :  { %1530 = vmatpush.bf16.msra.mxu3 %v2527_v59 }
  0xea   :  { %1573 = vmatpush.bf16.msrb.mxu2 %v2459_v57  ;;  %v2853_v57 = vld [vmem:[%s3097_s5 + $0x78] sm:$0xff] }
  0xeb   :  { %v969_v43 = vpop.f32.mrf.mxu0  ;;  %1531 = vmatpush.bf16.msra.mxu3 %v2519_v50  ;;  %1750 = vmatpush.bf16.msra.mxu1 %v2853_v57 }
  0xec   :  { %v970_v45 = vadd.f32 %v969_v43, %v202_v36  ;;  %v983_v0 = vpop.f32.mrf.mxu1 }
  0xee   :  { %v984_v55 = vadd.f32 %v983_v0, %v970_v45 }
  0xef   :  { %1580 = vmatpush.bf16.msrb.mxu3 %v2579_v58  ;;  %v2840_v58 = vld [vmem:[%s3097_s5 + $0x10] sm:$0xff] }
  0xf3   :  { %v997_v49 = vpop.f32.mrf.mxu2  ;;  %v971_v61 = vpop.f32.mrf.mxu0  ;;  %1581 = vmatpush.bf16.msrb.mxu3 %v2571_v4 }
  0xf4   :  { %v998_v54 = vadd.f32 %v997_v49, %v984_v55  ;;  %v1011_v56 = vpop.f32.mrf.mxu3  ;;  %v972_v62 = vadd.f32 %v971_v61, %v202_v36  ;;  %v985_v63 = vpop.f32.mrf.mxu1  ;;  %v2852_v61 = vld [vmem:[%s3097_s5 + $0x70] sm:$0xff] }
  0xf5   :  { %1751 = vmatpush.bf16.msra.mxu1 %v2852_v61 }
  0xf6   :  { %v1012_v3 = vadd.f32 %v1011_v56, %v998_v54  ;;  %1560 = vmatmul.bf16.vlgmr.msrb.gmra.mxu1 %v1089_v26  ;;  %v986_v5 = vadd.f32 %v985_v63, %v972_v62  ;;  %v2536_v26 = vld [vmem:[#allocation4 + $0x1a8] sm:$0xf0]  ;;  %v2842_v54 = vld [vmem:[%s3097_s5 + $0x20] sm:$0xff]  ;;  %v2841_v56 = vld [vmem:[%s3097_s5 + $0x18] sm:$0xff] }
  0xf7   :  { %1582 = vmatpush.bf16.msrb.mxu3 %v2563_v13  ;;  %v2539_v27 = vor.u32 %v2826_v25, %v2536_v26  ;;  %1739 = vmatpush.bf16.msra.mxu0 %v2842_v54  ;;  %v2839_v62 = vld [vmem:[%s3097_s5 + $0x8] sm:$0xff]  ;;  %v2846_v13 = vld [vmem:[%s3097_s5 + $0x40] sm:$0xff] }
  0xf8   :  { %v1074_v9 = vmul.f32 0.2, %v1012_v3  ;;  %v2851_v63 = vld [vmem:[%s3097_s5 + $0x68] sm:$0xff] }
  0xf9   :  { %1752 = vmatpush.bf16.msra.mxu1 %v2851_v63 }
  0xfa   :  { %v1082_v17 = vmax.f32 %v1012_v3, %v1074_v9  ;;  %v2849_v3 = vld [vmem:[%s3097_s5 + $0x58] sm:$0xff]  ;;  %v2847_v9 = vld [vmem:[%s3097_s5 + $0x48] sm:$0xff] }
  0xfb   :  { %v999_v6 = vpop.f32.mrf.mxu2  ;;  %1583 = vmatpush.bf16.msrb.mxu3 %v2555_v19  ;;  %1740 = vmatpush.bf16.msra.mxu0 %v2841_v56 }
  0xfc   :  { %v1000_v10 = vadd.f32 %v999_v6, %v986_v5  ;;  %v1013_v12 = vpop.f32.mrf.mxu3  ;;  %v2848_v6 = vld [vmem:[%s3097_s5 + $0x50] sm:$0xff] }
  0xfd   :  { %1753 = vmatpush.bf16.msra.mxu1 %v2850_v2 }
  0xfe   :  { %v1014_v14 = vadd.f32 %v1013_v12, %v1000_v10  ;;  %v1158_v10 = vperm.slane %v1156_v8, 0 }
  0xff   :  { %1584 = vmatpush.bf16.msrb.mxu3 %v2547_v24  ;;  %1741 = vmatpush.bf16.msra.mxu0 %v2840_v58 }
 0x100   :  { %v1078_v18 = vmul.f32 0.2, %v1014_v14 }
 0x101   :  { %1754 = vmatpush.bf16.msra.mxu1 %v2849_v3 }
 0x102   :  { %v1086_v20 = vmax.f32 %v1014_v14, %v1078_v18 }
 0x103   :  { %1585 = vmatpush.bf16.msrb.mxu3 %v2539_v27  ;;  %1742 = vmatpush.bf16.msra.mxu0 %v2839_v62 }
 0x104   :  { %v1090_v23 = vpack.c.bf16 %v1086_v20, %v1082_v17 }
 0x105   :  { %1755 = vmatpush.bf16.msra.mxu1 %v2848_v6 }
 0x106   :  { %1518 = vmatmul.bf16.vlgmr.msra.gmra.mxu2 %v1090_v23 }
 0x107   :  { %1586 = vmatpush.bf16.msrb.mxu3 %v2531_v32  ;;  %1743 = vmatpush.bf16.msra.mxu0 %v2838_v1 }
 0x109   :  { %1756 = vmatpush.bf16.msra.mxu1 %v2847_v9 }
 0x10b   :  { %v1025_v31 = vpop.f32.mrf.mxu0  ;;  %1587 = vmatpush.bf16.msrb.mxu3 %v2523_v37 }
 0x10c   :  { %v1026_v35 = vadd.f32 %v1025_v31, %v203_v30  ;;  %v1039_v36 = vpop.f32.mrf.mxu1 }
 0x10d   :  { %1757 = vmatpush.bf16.msra.mxu1 %v2846_v13 }
 0x10e   :  { %v1040_v38 = vadd.f32 %v1039_v36, %v1026_v35 }
 0x113   :  { %v1053_v39 = vpop.f32.mrf.mxu2  ;;  %v1027_v41 = vpop.f32.mrf.mxu0 }
 0x114   :  { %v1067_v40 = vpop.f32.mrf.mxu3  ;;  %v1054_v42 = vadd.f32 %v1053_v39, %v1040_v38  ;;  %v1028_v43 = vadd.f32 %v1027_v41, %v203_v30  ;;  %v1041_v59 = vpop.f32.mrf.mxu1  ;;  %v1159_v30 = vperm.slane %v1156_v8, 1 }
 0x116   :  { %1574 = vmatmul.bf16.vlgmr.msrb.gmra.mxu2 %v1090_v23  ;;  %v1068_v44 = vadd.f32 %v1067_v40, %v1054_v42  ;;  %v1042_v11 = vadd.f32 %v1041_v59, %v1028_v43 }
 0x118   :  { %v1075_v55 = vmul.f32 0.2, %v1068_v44 }
 0x11a   :  { %v1083_v48 = vmax.f32 %v1068_v44, %v1075_v55 }
 0x11b   :  { %v1055_v45 = vpop.f32.mrf.mxu2 }
 0x11c   :  { %v1056_v0 = vadd.f32 %v1055_v45, %v1042_v11  ;;  %v1069_v46 = vpop.f32.mrf.mxu3 }
 0x11e   :  { %v1070_v47 = vadd.f32 %v1069_v46, %v1056_v0 }
 0x120   :  { %v1079_v60 = vmul.f32 0.2, %v1070_v47 }
 0x122   :  { %v1087_v49 = vmax.f32 %v1070_v47, %v1079_v60 }
 0x124   :  { %v1091_v50 = vpack.c.bf16 %v1087_v49, %v1083_v48  ;;  %v2865_v49 = vld [vmem:[%s3098_s6] ss:$0 sm:$0xff] }
 0x126   :  { %1532 = vmatmul.bf16.vlgmr.msra.gmra.mxu3 %v1091_v50 }
 0x136   :  { %1588 = vmatmul.bf16.vlgmr.msrb.gmra.mxu3 %v1091_v50 }
 0x145   :  { %v1491_v4 = vpop.f32.mrf.mxu0 }
 0x146   :  { %v1492_v15 = vadd.f32 %v1491_v4, %v1158_v10 }
 0x14d   :  { %v1493_v12 = vpop.f32.mrf.mxu0 }
 0x14e   :  { %v1494_v19 = vadd.f32 %v1493_v12, %v1158_v10 }
 0x155   :  { %v1547_v23 = vpop.f32.mrf.mxu0 }
 0x156   :  { %v1548_v34 = vadd.f32 %v1547_v23, %v1159_v30 }
 0x15d   :  { %v1549_v36 = vpop.f32.mrf.mxu0 }
 0x15e   :  { %v1550_v40 = vadd.f32 %v1549_v36, %v1159_v30 }
 0x163   :  { %v1505_v5 = vpop.f32.mrf.mxu1 }
 0x164   :  { %v1506_v18 = vadd.f32 %v1505_v5, %v1492_v15 }
 0x16b   :  { %v1507_v14 = vpop.f32.mrf.mxu1 }
 0x16c   :  { %v1508_v21 = vadd.f32 %v1507_v14, %v1494_v19 }
 0x173   :  { %v1561_v25 = vpop.f32.mrf.mxu1 }
 0x174   :  { %v1562_v38 = vadd.f32 %v1561_v25, %v1548_v34 }
 0x17b   :  { %v1563_v39 = vpop.f32.mrf.mxu1 }
 0x17c   :  { %v1564_v43 = vadd.f32 %v1563_v39, %v1550_v40 }
 0x189   :  { %v1519_v7 = vpop.f32.mrf.mxu2 }
 0x18a   :  { %v1520_v20 = vadd.f32 %v1519_v7, %v1506_v18 }
 0x191   :  { %v1521_v16 = vpop.f32.mrf.mxu2 }
 0x192   :  { %v1522_v24 = vadd.f32 %v1521_v16, %v1508_v21 }
 0x199   :  { %v1575_v29 = vpop.f32.mrf.mxu2 }
 0x19a   :  { %v1576_v41 = vadd.f32 %v1575_v29, %v1562_v38 }
 0x1a1   :  { %v1577_v42 = vpop.f32.mrf.mxu2 }
 0x1a2   :  { %v1578_v44 = vadd.f32 %v1577_v42, %v1564_v43 }
 0x1a9   :  { %v1533_v17 = vpop.f32.mrf.mxu3 }
 0x1aa   :  { %v1534_v22 = vadd.f32 %v1533_v17, %v1520_v20 }
 0x1ac   :  { %v1594_v27 = vmul.f32 0.2, %v1534_v22 }
 0x1ae   :  { %v1598_v32 = vmax.f32 %v1534_v22, %v1594_v27 }
 0x1b1   :  { %v1535_v26 = vpop.f32.mrf.mxu3 }
 0x1b2   :  { %v1536_v28 = vadd.f32 %v1535_v26, %v1522_v24 }
 0x1b4   :  { %v1596_v31 = vmul.f32 0.2, %v1536_v28 }
 0x1b6   :  { %v1600_v33 = vmax.f32 %v1536_v28, %v1596_v31 }
 0x1b8   :  { %v1602_v35 = vpack.c.bf16 %v1600_v33, %v1598_v32 }
 0x1b9   :  { %v1589_v37 = vpop.f32.mrf.mxu3 }
 0x1ba   :  { %1744 = vmatmul.bf16.vlgmr.msra.gmra.mxu0 %v1602_v35  ;;  %v1590_v59 = vadd.f32 %v1589_v37, %v1576_v41 }
 0x1bc   :  { %v1595_v45 = vmul.f32 0.2, %v1590_v59 }
 0x1be   :  { %v1599_v55 = vmax.f32 %v1590_v59, %v1595_v45 }
 0x1c1   :  { %v1591_v11 = vpop.f32.mrf.mxu3 }
 0x1c2   :  { %v1592_v0 = vadd.f32 %v1591_v11, %v1578_v44 }
 0x1c4   :  { %v1597_v46 = vmul.f32 0.2, %v1592_v0 }
 0x1c6   :  { %v1601_v47 = vmax.f32 %v1592_v0, %v1597_v46 }
 0x1c8   :  { %v1603_v60 = vpack.c.bf16 %v1601_v47, %v1599_v55 }
 0x1ca   :  { %1758 = vmatmul.bf16.vlgmr.msra.gmra.mxu1 %v1603_v60 }
 0x237   :  { %v1745_v48 = vpop.f32.mrf.mxu0 }
 0x238   :  { %v1746_v50 = vadd.f32 %v2865_v49, %v1745_v48 }
 0x23f   :  { %v1747_v54 = vpop.f32.mrf.mxu0 }
 0x240   :  { %v1748_v56 = vadd.f32 %v2865_v49, %v1747_v54 }
 0x247   :  { %v1759_v51 = vpop.f32.mrf.mxu1 }
 0x248   :  { %v1760_v52 = vadd.f32 %v1759_v51, %v1746_v50 }
 0x24a   :  { %v2644_v53 = vmul.f32 -1.442695, %v1760_v52 }
 0x24c   :  { %2866 = vpow2.f32 %v2644_v53 }
 0x24f   :  { %v1761_v57 = vpop.f32.mrf.mxu1 }
 0x250   :  { %v1762_v58 = vadd.f32 %v1761_v57, %v1748_v56 }
 0x252   :  { %v2867_v61 = vpop.eup %2866  ;;  %v2645_v62 = vmul.f32 -1.442695, %v1762_v58 }
 0x253   :  { %v1770_v63 = vadd.f32 1.0, %v2867_v61 }
 0x254   :  { %2868 = vpow2.f32 %v2645_v62 }
 0x255   :  { %2870 = vrcp.f32 %v1770_v63  ;;  %vm1777_vm1 = vweird.f32 %v1770_v63  ;;  %v1783_v12 = vand.u32 2147483648, %v1770_v63  ;;  %v1781_v14 = vand.u32 2147483647, %v1770_v63 }
 0x257   :  { %v1784_v19 = vor.u32 1.1754944e-38, %v1783_v12  ;;  %vm1782_vm6 = vcmp.eq.f32.partialorder %v1781_v14, 8.507059e+37 }
 0x25a   :  { %v2869_v1 = vpop.eup %2868 }
 0x25b   :  { %v2871_v2 = vpop.eup %2870  ;;  %v1771_v3 = vadd.f32 1.0, %v2869_v1 }
 0x25c   :  { %v1773_v4 = vmul.f32 %v2871_v2, %v1770_v63  ;;  %vm1778_vm0 = vweird.f32 %v2871_v2 }
 0x25d   :  { %2872 = vrcp.f32 %v1771_v3  ;;  %v1798_v13 = vand.u32 2147483648, %v1771_v3  ;;  %v1796_v16 = vand.u32 2147483647, %v1771_v3  ;;  %vm1779_vm3 = vmor %vm1777_vm1, %vm1778_vm0  ;;  %vm1792_vm4 = vweird.f32 %v1771_v3 }
 0x25e   :  { %v1774_v5 = vsub.f32 1.0, %v1773_v4 }
 0x25f   :  { %v1799_v20 = vor.u32 1.1754944e-38, %v1798_v13  ;;  %vm1797_vm7 = vcmp.eq.f32.partialorder %v1796_v16, 8.507059e+37 }
 0x260   :  { %v1775_v6 = vmul.f32 %v2871_v2, %v1774_v5 }
 0x262   :  { %v1776_v9 = vadd.f32 %v2871_v2, %v1775_v6 }
 0x263   :  { %v2873_v7 = vpop.eup %2872 }
 0x264   :  { %v1788_v8 = vmul.f32 %v2873_v7, %v1771_v3  ;;  %vm1793_vm2 = vweird.f32 %v2873_v7  ;;  %v1780_v17 = vsel %vm1779_vm3, %v2871_v2, %v1776_v9 }
 0x265   :  { %vm1794_vm5 = vmor %vm1792_vm4, %vm1793_vm2  ;;  %v1785_v22 = vsel %vm1782_vm6, %v1784_v19, %v1780_v17 }
 0x266   :  { %v1789_v10 = vsub.f32 1.0, %v1788_v8 }
 0x268   :  { %v1790_v15 = vmul.f32 %v2873_v7, %v1789_v10 }
 0x26a   :  { %v1791_v18 = vadd.f32 %v2873_v7, %v1790_v15 }
 0x26c   :  { %v1795_v21 = vsel %vm1794_vm5, %v2873_v7, %v1791_v18 }
 0x26d   :  { %v1800_v23 = vsel %vm1797_vm7, %v1799_v20, %v1795_v21 }
 0x26e   :  { %v2857_v24 = vpack.c.bf16 %v1800_v23, %v1785_v22 }
 0x270   :  { %2858 = vst [vmem:[%s3099_s7] sm:$0xff] %v2857_v24  }
 0x271   :  { %1810 = vsyncpa [#allocation3], 1 }
 0x272   :  { %1811 = vsyncpa [#allocation5], 1 }

</bundles_post_ra>
